<compile_context>
chip_gen: v7x
topology: tpu7x:2x2x1
jax: 0.10.0
libtpu: 0.0.40
codegen_flags: <defaults>
</compile_context>

<pallas_src>
import jax
import jax.numpy as jnp
from jax.experimental import pallas as pl
from jax.experimental.pallas import tpu as pltpu


# ----------------------------- fused Pallas kernel -----------------------------
#
# Sizes (per sample, fixed by the architecture / L=411):
#   x       : 411 rows of 128 lanes (54 real channels)
#   x1_s    : 424 rows  = conv1-padded bn0 output  (rows 0 and 412 are the conv pads)
#   conv1   : 208 rows computed (206 valid)         -> h1_s (208, 128)
#   pool1   : 103 rows, + bn1, written into x2_s rows 1..103 (row 0 / 104 conv pads)
#   conv2   : 56 rows computed (52 valid)           -> h2_s (56, 128)
#   pool2   : 26 rows, + bn2, fc reduce -> sigmoid scalar

def net_kernel(x_ref, c_ref, w1_ref, w2_ref, wfc_ref, bfc_ref, o_ref,
               x1_s, h1_s, x2_s, h2_s):
    f32 = jnp.float32
    bf16 = jnp.bfloat16

    # packed per-channel constants (each row is (1, 128))
    s0 = c_ref[0:1, :]
    t0 = c_ref[1:2, :]
    b1 = c_ref[2:3, :]
    s1 = c_ref[3:4, :]
    t1 = c_ref[4:5, :]
    b2 = c_ref[5:6, :]
    s2 = c_ref[6:7, :]
    t2 = c_ref[7:8, :]

    # ---- bn0 (eval-mode affine) written into the conv1-padded buffer ----
    # zero only the pad region actually read by conv1 (rows 0 and 412..416);
    # data rows 1..411 are overwritten right after.
    x1_s[pl.ds(0, 8), :] = jnp.zeros((8, 128), f32)
    x1_s[pl.ds(408, 16), :] = jnp.zeros((16, 128), f32)
    x1_s[pl.ds(1, 411), :] = x_ref[0, pl.ds(0, 411), :] * s0 + t0

    # ---- conv1 (k=3, s=2, p=1) + bias + ReLU : 3 per-tap MXU matmuls ----
    acc = jnp.dot(x1_s[pl.ds(0, 208, 2), :].astype(bf16), w1_ref[0],
                  preferred_element_type=f32)
    acc += jnp.dot(x1_s[pl.ds(1, 208, 2), :].astype(bf16), w1_ref[1],
                   preferred_element_type=f32)
    acc += jnp.dot(x1_s[pl.ds(2, 208, 2), :].astype(bf16), w1_ref[2],
                   preferred_element_type=f32)
    h1_s[...] = jnp.maximum(acc + b1, 0.0)

    # ---- maxpool(2,2) + bn1, written into the conv2-padded buffer ----
    p1 = jnp.maximum(h1_s[pl.ds(0, 103, 2), :], h1_s[pl.ds(1, 103, 2), :])
    x2_s[pl.ds(0, 8), :] = jnp.zeros((8, 128), f32)
    x2_s[pl.ds(96, 24), :] = jnp.zeros((24, 128), f32)
    x2_s[pl.ds(1, 103), :] = p1 * s1 + t1

    # ---- conv2 (k=3, s=2, p=1) + bias + ReLU ----
    acc2 = jnp.dot(x2_s[pl.ds(0, 56, 2), :].astype(bf16), w2_ref[0],
                   preferred_element_type=f32)
    acc2 += jnp.dot(x2_s[pl.ds(1, 56, 2), :].astype(bf16), w2_ref[1],
                    preferred_element_type=f32)
    acc2 += jnp.dot(x2_s[pl.ds(2, 56, 2), :].astype(bf16), w2_ref[2],
                    preferred_element_type=f32)
    h2_s[...] = jnp.maximum(acc2 + b2, 0.0)

    # ---- maxpool(2,2) + bn2 ----
    p2 = jnp.maximum(h2_s[pl.ds(0, 26, 2), :], h2_s[pl.ds(1, 26, 2), :])
    p2 = p2 * s2 + t2                                     # (26, 128)

    # ---- fc1 (flatten folded into the weight layout) + sigmoid, VPU reduce ----
    n_cls = o_ref.shape[2]
    zs = []
    for n in range(n_cls):                                # static, tiny n_cls
        prod = p2 * wfc_ref[n]                            # (26, 128)
        s = jnp.sum(prod, axis=0, keepdims=True)          # (1, 128) sublane reduce
        zs.append(jnp.sum(s, axis=1, keepdims=True))      # (1, 1)   lane reduce
    z = zs[0] if n_cls == 1 else jnp.concatenate(zs, axis=1)
    z = z + bfc_ref[...]
    o_ref[0] = pl.reciprocal(1.0 + jnp.exp(-z))           # sigmoid (exp on EUP)


# ----------------------------- JAX glue (weight/layout prep) -----------------------------

def bn_affine(gamma, beta, mean, var, eps=1e-5):
    scale = gamma / jnp.sqrt(var + eps)
    shift = beta - mean * scale
    return scale, shift


def pad_row128(v):
    """(C,) -> (1, 128) zero padded."""
    return jnp.pad(v, (0, 128 - v.shape[0])).reshape(1, 128)


def conv_taps(w, b):
    """PyTorch Conv1d weight (Cout, Cin, K) -> per-tap (K, 128, 128) bf16, bias -> (1, 128) f32."""
    cout, cin, _ = w.shape
    taps = jnp.transpose(w, (2, 1, 0))                               # (K, Cin, Cout)
    taps = jnp.pad(taps, ((0, 0), (0, 128 - cin), (0, 128 - cout)))  # (K, 128, 128)
    return taps.astype(jnp.bfloat16), pad_row128(b)


def fc_weight(wfc):
    """fc1 weight (N, 2600) -> (N, 26, 128); absorbs the NCL flatten (f = c*26 + l)."""
    n_cls = wfc.shape[0]
    w = wfc.reshape(n_cls, 100, 26).transpose(0, 2, 1)               # (N, 26, 100)
    return jnp.pad(w, ((0, 0), (0, 0), (0, 28)))                     # (N, 26, 128)


def init_params(key, num_classes=1):
    ks = jax.random.split(key, 20)

    def kaiming_uniform(k, shape, fan_in):
        bound = (6.0 / fan_in) ** 0.5
        return jax.random.uniform(k, shape, jnp.float32, -bound, bound)

    def bn_params(k0, k1, k2, k3, c):
        return dict(
            gamma=1.0 + 0.1 * jax.random.normal(ks[k0], (c,), jnp.float32),
            beta=0.1 * jax.random.normal(ks[k1], (c,), jnp.float32),
            mean=0.1 * jax.random.normal(ks[k2], (c,), jnp.float32),
            var=jax.random.uniform(ks[k3], (c,), jnp.float32, 0.5, 1.5),
        )

    params = {
        "bn0": bn_params(0, 1, 2, 3, 54),
        "conv1_w": kaiming_uniform(ks[4], (100, 54, 3), 54 * 3),
        "conv1_b": kaiming_uniform(ks[5], (100,), 54 * 3),
        "bn1": bn_params(6, 7, 8, 9, 100),
        "conv2_w": kaiming_uniform(ks[10], (100, 100, 3), 100 * 3),
        "conv2_b": kaiming_uniform(ks[11], (100,), 100 * 3),
        "bn2": bn_params(12, 13, 14, 15, 100),
        "fc1_w": jax.random.uniform(
            ks[16], (num_classes, 2600), jnp.float32,
            -(6.0 / (2600 + num_classes)) ** 0.5, (6.0 / (2600 + num_classes)) ** 0.5),
        "fc1_b": jax.random.uniform(
            ks[17], (num_classes,), jnp.float32,
            -(1.0 / 2600) ** 0.5, (1.0 / 2600) ** 0.5),
    }
    return params


@jax.jit
def net_forward(x_ncl, params):
    """x_ncl: (B, 54, 411) in PyTorch NCL layout. Returns (B, num_classes)."""
    B, C_in, L = x_ncl.shape
    assert (C_in, L) == (54, 411), "fc1(2600) fixes the input to (54, 411)"
    n_cls = params["fc1_w"].shape[0]

    # NLC layout, channels padded to 128 lanes, length padded to a sublane multiple.
    x_nlc = jnp.transpose(x_ncl, (0, 2, 1)).astype(jnp.float32)      # (B, 411, 54)
    x_pad = jnp.pad(x_nlc, ((0, 0), (0, 416 - L), (0, 128 - C_in)))  # (B, 416, 128)

    # eval-mode BN affines (per-channel), padded to 128 lanes.
    s0, t0 = bn_affine(**params["bn0"])
    s1, t1 = bn_affine(**params["bn1"])
    s2, t2 = bn_affine(**params["bn2"])

    w1, b1 = conv_taps(params["conv1_w"], params["conv1_b"])
    w2, b2 = conv_taps(params["conv2_w"], params["conv2_b"])
    consts = jnp.concatenate(
        [pad_row128(s0), pad_row128(t0), b1,
         pad_row128(s1), pad_row128(t1), b2,
         pad_row128(s2), pad_row128(t2)], axis=0)                    # (8, 128)
    wfc = fc_weight(params["fc1_w"])                                 # (N, 26, 128)
    bfc = params["fc1_b"].reshape(1, n_cls)

    out = pl.pallas_call(
        net_kernel,
        grid=(B,),
        in_specs=[
            pl.BlockSpec((1, 416, 128), lambda b: (b, 0, 0)),        # x (per sample)
            # constant index_maps: fetched once, not re-DMA'd per grid step
            pl.BlockSpec((8, 128), lambda b: (0, 0)),                # packed BN/bias consts
            pl.BlockSpec((3, 128, 128), lambda b: (0, 0, 0)),        # conv1 taps (bf16)
            pl.BlockSpec((3, 128, 128), lambda b: (0, 0, 0)),        # conv2 taps (bf16)
            pl.BlockSpec((n_cls, 26, 128), lambda b: (0, 0, 0)),     # fc weight
            pl.BlockSpec((1, n_cls), lambda b: (0, 0)),              # fc bias
        ],
        out_specs=pl.BlockSpec((1, 1, n_cls), lambda b: (b, 0, 0)),
        out_shape=jax.ShapeDtypeStruct((B, 1, n_cls), jnp.float32),
        scratch_shapes=[
            pltpu.VMEM((424, 128), jnp.float32),   # x1_s : bn0 out, conv1-padded
            pltpu.VMEM((208, 128), jnp.float32),   # h1_s : conv1+relu out
            pltpu.VMEM((120, 128), jnp.float32),   # x2_s : pool1+bn1, conv2-padded
            pltpu.VMEM((56, 128), jnp.float32),    # h2_s : conv2+relu out
        ],
        compiler_params=pltpu.CompilerParams(
            dimension_semantics=("parallel",)),
    )(x_pad, consts, w1, w2, wfc, bfc)

    return out.reshape(B, n_cls)


if __name__ == "__main__":
    num_classes = 1
    B, C_in, L = 2, 54, 411  # L=411 so the flattened size is 100*26 = 2600

    key = jax.random.PRNGKey(0)
    k_x, k_p = jax.random.split(key)
    x = jax.random.normal(k_x, (B, C_in, L), dtype=jnp.float32)
    params = init_params(k_p, num_classes)

    out = net_forward(x, params)
    out = jax.block_until_ready(out)
    assert out.shape == (B, num_classes)
    assert bool(jnp.all(jnp.isfinite(out)))
    assert bool(jnp.all((out >= 0.0) & (out <= 1.0)))
    print("KERNEL_OK")
</pallas_src>

<mosaic_0001>
module attributes {stable_mosaic.version = 11 : i64} {
  func.func @net_kernel(%arg0: i32, %arg1: memref<1x416x128xf32, #tpu.memory_space<vmem>>, %arg2: memref<8x128xf32, #tpu.memory_space<vmem>>, %arg3: memref<3x128x128xbf16, #tpu.memory_space<vmem>>, %arg4: memref<3x128x128xbf16, #tpu.memory_space<vmem>>, %arg5: memref<1x26x128xf32, #tpu.memory_space<vmem>>, %arg6: memref<1x1xf32, #tpu.memory_space<vmem>>, %arg7: memref<1x1x1xf32, #tpu.memory_space<vmem>>, %arg8: memref<424x128xf32, #tpu.memory_space<vmem>>, %arg9: memref<208x128xf32, #tpu.memory_space<vmem>>, %arg10: memref<120x128xf32, #tpu.memory_space<vmem>>, %arg11: memref<56x128xf32, #tpu.memory_space<vmem>>) attributes {dimension_semantics = [#tpu.dimension_semantics<parallel>], iteration_bounds = array<i64: 2>, scalar_prefetch = 0 : i64, scratch_operands = 4 : i64, tpu.core_type = #tpu.core_type<tc>, window_params = [{transform_indices = @transform_0, window_bounds = array<i64: 1, 416, 128>}, {pipeline_mode = #tpu.pipeline_mode<synchronous>, transform_indices = @transform_1, window_bounds = array<i64: 8, 128>}, {pipeline_mode = #tpu.pipeline_mode<synchronous>, transform_indices = @transform_2, window_bounds = array<i64: 3, 128, 128>}, {pipeline_mode = #tpu.pipeline_mode<synchronous>, transform_indices = @transform_3, window_bounds = array<i64: 3, 128, 128>}, {pipeline_mode = #tpu.pipeline_mode<synchronous>, transform_indices = @transform_4, window_bounds = array<i64: 1, 26, 128>}, {pipeline_mode = #tpu.pipeline_mode<synchronous>, transform_indices = @transform_5, window_bounds = array<i64: 1, 1>}, {transform_indices = @transform_6, window_bounds = array<i64: 1, 1, 1>}]} {
    %c0 = arith.constant 0 : index
    %c0_0 = arith.constant 0 : index
    %0 = vector.load %arg2[%c0, %c0_0] : memref<8x128xf32, #tpu.memory_space<vmem>>, vector<1x128xf32>
    %c1 = arith.constant 1 : index
    %c0_1 = arith.constant 0 : index
    %1 = vector.load %arg2[%c1, %c0_1] : memref<8x128xf32, #tpu.memory_space<vmem>>, vector<1x128xf32>
    %c2 = arith.constant 2 : index
    %c0_2 = arith.constant 0 : index
    %2 = vector.load %arg2[%c2, %c0_2] : memref<8x128xf32, #tpu.memory_space<vmem>>, vector<1x128xf32>
    %c3 = arith.constant 3 : index
    %c0_3 = arith.constant 0 : index
    %3 = vector.load %arg2[%c3, %c0_3] : memref<8x128xf32, #tpu.memory_space<vmem>>, vector<1x128xf32>
    %c4 = arith.constant 4 : index
    %c0_4 = arith.constant 0 : index
    %4 = vector.load %arg2[%c4, %c0_4] : memref<8x128xf32, #tpu.memory_space<vmem>>, vector<1x128xf32>
    %c5 = arith.constant 5 : index
    %c0_5 = arith.constant 0 : index
    %5 = vector.load %arg2[%c5, %c0_5] : memref<8x128xf32, #tpu.memory_space<vmem>>, vector<1x128xf32>
    %c6 = arith.constant 6 : index
    %c0_6 = arith.constant 0 : index
    %6 = vector.load %arg2[%c6, %c0_6] : memref<8x128xf32, #tpu.memory_space<vmem>>, vector<1x128xf32>
    %c7 = arith.constant 7 : index
    %c0_7 = arith.constant 0 : index
    %7 = vector.load %arg2[%c7, %c0_7] : memref<8x128xf32, #tpu.memory_space<vmem>>, vector<1x128xf32>
    %cst = arith.constant 0.000000e+00 : f32
    %8 = vector.broadcast %cst : f32 to vector<8x128xf32>
    %c0_8 = arith.constant 0 : index
    %c0_9 = arith.constant 0 : index
    %9 = vector.load %arg8[%c0_8, %c0_9] : memref<424x128xf32, #tpu.memory_space<vmem>>, vector<8x128xf32>
    tpu.vector_store %arg8[%c0_8, %c0_9], %8 {strides = array<i32>} : memref<424x128xf32, #tpu.memory_space<vmem>>, vector<8x128xf32>,
    %cst_10 = arith.constant 0.000000e+00 : f32
    %10 = vector.broadcast %cst_10 : f32 to vector<16x128xf32>
    %c408 = arith.constant 408 : index
    %c0_11 = arith.constant 0 : index
    %11 = vector.load %arg8[%c408, %c0_11] : memref<424x128xf32, #tpu.memory_space<vmem>>, vector<16x128xf32>
    tpu.vector_store %arg8[%c408, %c0_11], %10 {strides = array<i32>} : memref<424x128xf32, #tpu.memory_space<vmem>>, vector<16x128xf32>,
    %c0_12 = arith.constant 0 : index
    %c0_13 = arith.constant 0 : index
    %c0_14 = arith.constant 0 : index
    %12 = vector.load %arg1[%c0_12, %c0_13, %c0_14] : memref<1x416x128xf32, #tpu.memory_space<vmem>>, vector<1x411x128xf32>
    %13 = vector.shape_cast %12 : vector<1x411x128xf32> to vector<411x128xf32>
    %14 = vector.broadcast %0 : vector<1x128xf32> to vector<411x128xf32>
    %15 = arith.mulf %13, %14 : vector<411x128xf32>
    %16 = vector.broadcast %1 : vector<1x128xf32> to vector<411x128xf32>
    %17 = arith.addf %15, %16 : vector<411x128xf32>
    %c1_15 = arith.constant 1 : index
    %c0_16 = arith.constant 0 : index
    %18 = vector.load %arg8[%c1_15, %c0_16] : memref<424x128xf32, #tpu.memory_space<vmem>>, vector<411x128xf32>
    tpu.vector_store %arg8[%c1_15, %c0_16], %17 {strides = array<i32>} : memref<424x128xf32, #tpu.memory_space<vmem>>, vector<411x128xf32>,
    %c0_17 = arith.constant 0 : index
    %c0_18 = arith.constant 0 : index
    %19 = tpu.strided_load %arg8[%c0_17, %c0_18] {strides = array<i32: 2, 1>} : memref<424x128xf32, #tpu.memory_space<vmem>>, vector<208x128xf32>
    %20 = arith.truncf %19 : vector<208x128xf32> to vector<208x128xbf16>
    %c0_19 = arith.constant 0 : index
    %c0_20 = arith.constant 0 : index
    %c0_21 = arith.constant 0 : index
    %21 = vector.load %arg3[%c0_19, %c0_20, %c0_21] : memref<3x128x128xbf16, #tpu.memory_space<vmem>>, vector<1x128x128xbf16>
    %22 = vector.shape_cast %21 : vector<1x128x128xbf16> to vector<128x128xbf16>
    %cst_22 = arith.constant dense<0.000000e+00> : vector<208x128xf32>
    %23 = tpu.matmul %20, %22, %cst_22 {dimension_numbers = #tpu.dot_dimension_numbers<[1], [0], [0], [1], [0, 0, 1, 1], [], []>} : vector<208x128xbf16>, vector<128x128xbf16>, vector<208x128xf32> -> vector<208x128xf32>
    %c1_23 = arith.constant 1 : index
    %c0_24 = arith.constant 0 : index
    %24 = tpu.strided_load %arg8[%c1_23, %c0_24] {strides = array<i32: 2, 1>} : memref<424x128xf32, #tpu.memory_space<vmem>>, vector<208x128xf32>
    %25 = arith.truncf %24 : vector<208x128xf32> to vector<208x128xbf16>
    %c1_25 = arith.constant 1 : index
    %c0_26 = arith.constant 0 : index
    %c0_27 = arith.constant 0 : index
    %26 = vector.load %arg3[%c1_25, %c0_26, %c0_27] : memref<3x128x128xbf16, #tpu.memory_space<vmem>>, vector<1x128x128xbf16>
    %27 = vector.shape_cast %26 : vector<1x128x128xbf16> to vector<128x128xbf16>
    %cst_28 = arith.constant dense<0.000000e+00> : vector<208x128xf32>
    %28 = tpu.matmul %25, %27, %cst_28 {dimension_numbers = #tpu.dot_dimension_numbers<[1], [0], [0], [1], [0, 0, 1, 1], [], []>} : vector<208x128xbf16>, vector<128x128xbf16>, vector<208x128xf32> -> vector<208x128xf32>
    %29 = arith.addf %23, %28 : vector<208x128xf32>
    %c2_29 = arith.constant 2 : index
    %c0_30 = arith.constant 0 : index
    %30 = tpu.strided_load %arg8[%c2_29, %c0_30] {strides = array<i32: 2, 1>} : memref<424x128xf32, #tpu.memory_space<vmem>>, vector<208x128xf32>
    %31 = arith.truncf %30 : vector<208x128xf32> to vector<208x128xbf16>
    %c2_31 = arith.constant 2 : index
    %c0_32 = arith.constant 0 : index
    %c0_33 = arith.constant 0 : index
    %32 = vector.load %arg3[%c2_31, %c0_32, %c0_33] : memref<3x128x128xbf16, #tpu.memory_space<vmem>>, vector<1x128x128xbf16>
    %33 = vector.shape_cast %32 : vector<1x128x128xbf16> to vector<128x128xbf16>
    %cst_34 = arith.constant dense<0.000000e+00> : vector<208x128xf32>
    %34 = tpu.matmul %31, %33, %cst_34 {dimension_numbers = #tpu.dot_dimension_numbers<[1], [0], [0], [1], [0, 0, 1, 1], [], []>} : vector<208x128xbf16>, vector<128x128xbf16>, vector<208x128xf32> -> vector<208x128xf32>
    %35 = arith.addf %29, %34 : vector<208x128xf32>
    %36 = vector.broadcast %2 : vector<1x128xf32> to vector<208x128xf32>
    %37 = arith.addf %35, %36 : vector<208x128xf32>
    %cst_35 = arith.constant 0.000000e+00 : f32
    %38 = vector.broadcast %cst_35 : f32 to vector<208x128xf32>
    %39 = arith.maximumf %37, %38 : vector<208x128xf32>
    %c0_36 = arith.constant 0 : index
    %c0_37 = arith.constant 0 : index
    %40 = vector.load %arg9[%c0_36, %c0_37] : memref<208x128xf32, #tpu.memory_space<vmem>>, vector<208x128xf32>
    tpu.vector_store %arg9[%c0_36, %c0_37], %39 {strides = array<i32>} : memref<208x128xf32, #tpu.memory_space<vmem>>, vector<208x128xf32>,
    %c0_38 = arith.constant 0 : index
    %c0_39 = arith.constant 0 : index
    %41 = tpu.strided_load %arg9[%c0_38, %c0_39] {strides = array<i32: 2, 1>} : memref<208x128xf32, #tpu.memory_space<vmem>>, vector<103x128xf32>
    %c1_40 = arith.constant 1 : index
    %c0_41 = arith.constant 0 : index
    %42 = tpu.strided_load %arg9[%c1_40, %c0_41] {strides = array<i32: 2, 1>} : memref<208x128xf32, #tpu.memory_space<vmem>>, vector<103x128xf32>
    %43 = arith.maximumf %41, %42 : vector<103x128xf32>
    %cst_42 = arith.constant 0.000000e+00 : f32
    %44 = vector.broadcast %cst_42 : f32 to vector<8x128xf32>
    %c0_43 = arith.constant 0 : index
    %c0_44 = arith.constant 0 : index
    %45 = vector.load %arg10[%c0_43, %c0_44] : memref<120x128xf32, #tpu.memory_space<vmem>>, vector<8x128xf32>
    tpu.vector_store %arg10[%c0_43, %c0_44], %44 {strides = array<i32>} : memref<120x128xf32, #tpu.memory_space<vmem>>, vector<8x128xf32>,
    %cst_45 = arith.constant 0.000000e+00 : f32
    %46 = vector.broadcast %cst_45 : f32 to vector<24x128xf32>
    %c96 = arith.constant 96 : index
    %c0_46 = arith.constant 0 : index
    %47 = vector.load %arg10[%c96, %c0_46] : memref<120x128xf32, #tpu.memory_space<vmem>>, vector<24x128xf32>
    tpu.vector_store %arg10[%c96, %c0_46], %46 {strides = array<i32>} : memref<120x128xf32, #tpu.memory_space<vmem>>, vector<24x128xf32>,
    %48 = vector.broadcast %3 : vector<1x128xf32> to vector<103x128xf32>
    %49 = arith.mulf %43, %48 : vector<103x128xf32>
    %50 = vector.broadcast %4 : vector<1x128xf32> to vector<103x128xf32>
    %51 = arith.addf %49, %50 : vector<103x128xf32>
    %c1_47 = arith.constant 1 : index
    %c0_48 = arith.constant 0 : index
    %52 = vector.load %arg10[%c1_47, %c0_48] : memref<120x128xf32, #tpu.memory_space<vmem>>, vector<103x128xf32>
    tpu.vector_store %arg10[%c1_47, %c0_48], %51 {strides = array<i32>} : memref<120x128xf32, #tpu.memory_space<vmem>>, vector<103x128xf32>,
    %c0_49 = arith.constant 0 : index
    %c0_50 = arith.constant 0 : index
    %53 = tpu.strided_load %arg10[%c0_49, %c0_50] {strides = array<i32: 2, 1>} : memref<120x128xf32, #tpu.memory_space<vmem>>, vector<56x128xf32>
    %54 = arith.truncf %53 : vector<56x128xf32> to vector<56x128xbf16>
    %c0_51 = arith.constant 0 : index
    %c0_52 = arith.constant 0 : index
    %c0_53 = arith.constant 0 : index
    %55 = vector.load %arg4[%c0_51, %c0_52, %c0_53] : memref<3x128x128xbf16, #tpu.memory_space<vmem>>, vector<1x128x128xbf16>
    %56 = vector.shape_cast %55 : vector<1x128x128xbf16> to vector<128x128xbf16>
    %cst_54 = arith.constant dense<0.000000e+00> : vector<56x128xf32>
    %57 = tpu.matmul %54, %56, %cst_54 {dimension_numbers = #tpu.dot_dimension_numbers<[1], [0], [0], [1], [0, 0, 1, 1], [], []>} : vector<56x128xbf16>, vector<128x128xbf16>, vector<56x128xf32> -> vector<56x128xf32>
    %c1_55 = arith.constant 1 : index
    %c0_56 = arith.constant 0 : index
    %58 = tpu.strided_load %arg10[%c1_55, %c0_56] {strides = array<i32: 2, 1>} : memref<120x128xf32, #tpu.memory_space<vmem>>, vector<56x128xf32>
    %59 = arith.truncf %58 : vector<56x128xf32> to vector<56x128xbf16>
    %c1_57 = arith.constant 1 : index
    %c0_58 = arith.constant 0 : index
    %c0_59 = arith.constant 0 : index
    %60 = vector.load %arg4[%c1_57, %c0_58, %c0_59] : memref<3x128x128xbf16, #tpu.memory_space<vmem>>, vector<1x128x128xbf16>
    %61 = vector.shape_cast %60 : vector<1x128x128xbf16> to vector<128x128xbf16>
    %cst_60 = arith.constant dense<0.000000e+00> : vector<56x128xf32>
    %62 = tpu.matmul %59, %61, %cst_60 {dimension_numbers = #tpu.dot_dimension_numbers<[1], [0], [0], [1], [0, 0, 1, 1], [], []>} : vector<56x128xbf16>, vector<128x128xbf16>, vector<56x128xf32> -> vector<56x128xf32>
    %63 = arith.addf %57, %62 : vector<56x128xf32>
    %c2_61 = arith.constant 2 : index
    %c0_62 = arith.constant 0 : index
    %64 = tpu.strided_load %arg10[%c2_61, %c0_62] {strides = array<i32: 2, 1>} : memref<120x128xf32, #tpu.memory_space<vmem>>, vector<56x128xf32>
    %65 = arith.truncf %64 : vector<56x128xf32> to vector<56x128xbf16>
    %c2_63 = arith.constant 2 : index
    %c0_64 = arith.constant 0 : index
    %c0_65 = arith.constant 0 : index
    %66 = vector.load %arg4[%c2_63, %c0_64, %c0_65] : memref<3x128x128xbf16, #tpu.memory_space<vmem>>, vector<1x128x128xbf16>
    %67 = vector.shape_cast %66 : vector<1x128x128xbf16> to vector<128x128xbf16>
    %cst_66 = arith.constant dense<0.000000e+00> : vector<56x128xf32>
    %68 = tpu.matmul %65, %67, %cst_66 {dimension_numbers = #tpu.dot_dimension_numbers<[1], [0], [0], [1], [0, 0, 1, 1], [], []>} : vector<56x128xbf16>, vector<128x128xbf16>, vector<56x128xf32> -> vector<56x128xf32>
    %69 = arith.addf %63, %68 : vector<56x128xf32>
    %70 = vector.broadcast %5 : vector<1x128xf32> to vector<56x128xf32>
    %71 = arith.addf %69, %70 : vector<56x128xf32>
    %cst_67 = arith.constant 0.000000e+00 : f32
    %72 = vector.broadcast %cst_67 : f32 to vector<56x128xf32>
    %73 = arith.maximumf %71, %72 : vector<56x128xf32>
    %c0_68 = arith.constant 0 : index
    %c0_69 = arith.constant 0 : index
    %74 = vector.load %arg11[%c0_68, %c0_69] : memref<56x128xf32, #tpu.memory_space<vmem>>, vector<56x128xf32>
    tpu.vector_store %arg11[%c0_68, %c0_69], %73 {strides = array<i32>} : memref<56x128xf32, #tpu.memory_space<vmem>>, vector<56x128xf32>,
    %c0_70 = arith.constant 0 : index
    %c0_71 = arith.constant 0 : index
    %75 = tpu.strided_load %arg11[%c0_70, %c0_71] {strides = array<i32: 2, 1>} : memref<56x128xf32, #tpu.memory_space<vmem>>, vector<26x128xf32>
    %c1_72 = arith.constant 1 : index
    %c0_73 = arith.constant 0 : index
    %76 = tpu.strided_load %arg11[%c1_72, %c0_73] {strides = array<i32: 2, 1>} : memref<56x128xf32, #tpu.memory_space<vmem>>, vector<26x128xf32>
    %77 = arith.maximumf %75, %76 : vector<26x128xf32>
    %78 = vector.broadcast %6 : vector<1x128xf32> to vector<26x128xf32>
    %79 = arith.mulf %77, %78 : vector<26x128xf32>
    %80 = vector.broadcast %7 : vector<1x128xf32> to vector<26x128xf32>
    %81 = arith.addf %79, %80 : vector<26x128xf32>
    %c0_74 = arith.constant 0 : index
    %c0_75 = arith.constant 0 : index
    %c0_76 = arith.constant 0 : index
    %82 = vector.load %arg5[%c0_74, %c0_75, %c0_76] : memref<1x26x128xf32, #tpu.memory_space<vmem>>, vector<1x26x128xf32>
    %83 = vector.shape_cast %82 : vector<1x26x128xf32> to vector<26x128xf32>
    %84 = arith.mulf %81, %83 : vector<26x128xf32>
    %cst_77 = arith.constant dense<0.000000e+00> : vector<128xf32>
    %85 = vector.multi_reduction <add>, %84, %cst_77 [0] : vector<26x128xf32> to vector<128xf32>
    %86 = vector.shape_cast %85 : vector<128xf32> to vector<1x128xf32>
    %cst_78 = arith.constant dense<0.000000e+00> : vector<1xf32>
    %87 = vector.multi_reduction <add>, %86, %cst_78 [1] : vector<1x128xf32> to vector<1xf32>
    %88 = vector.shape_cast %87 : vector<1xf32> to vector<1x1xf32>
    %c0_79 = arith.constant 0 : index
    %c0_80 = arith.constant 0 : index
    %89 = vector.load %arg6[%c0_79, %c0_80] : memref<1x1xf32, #tpu.memory_space<vmem>>, vector<1x1xf32>
    %90 = arith.addf %88, %89 : vector<1x1xf32>
    %cst_81 = arith.constant 0.000000e+00 : f32
    %91 = vector.broadcast %cst_81 : f32 to vector<1x1xf32>
    %92 = arith.subf %91, %90 : vector<1x1xf32>
    %93 = math.exp %92 : vector<1x1xf32>
    %cst_82 = arith.constant 1.000000e+00 : f32
    %94 = vector.broadcast %cst_82 : f32 to vector<1x1xf32>
    %95 = arith.addf %94, %93 : vector<1x1xf32>
    %96 = tpu.reciprocal %95 : vector<1x1xf32> -> vector<1x1xf32>
    %c0_83 = arith.constant 0 : index
    %c0_84 = arith.constant 0 : index
    %c0_85 = arith.constant 0 : index
    %97 = vector.load %arg7[%c0_83, %c0_84, %c0_85] : memref<1x1x1xf32, #tpu.memory_space<vmem>>, vector<1x1x1xf32>
    %98 = vector.shape_cast %97 : vector<1x1x1xf32> to vector<1x1xf32>
    %99 = vector.shape_cast %96 : vector<1x1xf32> to vector<1x1x1xf32>
    tpu.vector_store %arg7[%c0_83, %c0_84, %c0_85], %99 {strides = array<i32>} : memref<1x1x1xf32, #tpu.memory_space<vmem>>, vector<1x1x1xf32>,
    return
  }
  func.func @transform_0(%arg0: i32) -> (i32, i32, i32) {
    %c0_i32 = arith.constant 0 : i32
    %c0_i32_0 = arith.constant 0 : i32
    %c0_i32_1 = arith.constant 0 : i32
    return %arg0, %c0_i32, %c0_i32_0 : i32, i32, i32
  }
  func.func @transform_1(%arg0: i32) -> (i32, i32) {
    %c0_i32 = arith.constant 0 : i32
    %c0_i32_0 = arith.constant 0 : i32
    %c0_i32_1 = arith.constant 0 : i32
    return %c0_i32, %c0_i32_0 : i32, i32
  }
  func.func @transform_2(%arg0: i32) -> (i32, i32, i32) {
    %c0_i32 = arith.constant 0 : i32
    %c0_i32_0 = arith.constant 0 : i32
    %c0_i32_1 = arith.constant 0 : i32
    %c0_i32_2 = arith.constant 0 : i32
    return %c0_i32, %c0_i32_0, %c0_i32_1 : i32, i32, i32
  }
  func.func @transform_3(%arg0: i32) -> (i32, i32, i32) {
    %c0_i32 = arith.constant 0 : i32
    %c0_i32_0 = arith.constant 0 : i32
    %c0_i32_1 = arith.constant 0 : i32
    %c0_i32_2 = arith.constant 0 : i32
    return %c0_i32, %c0_i32_0, %c0_i32_1 : i32, i32, i32
  }
  func.func @transform_4(%arg0: i32) -> (i32, i32, i32) {
    %c0_i32 = arith.constant 0 : i32
    %c0_i32_0 = arith.constant 0 : i32
    %c0_i32_1 = arith.constant 0 : i32
    %c0_i32_2 = arith.constant 0 : i32
    return %c0_i32, %c0_i32_0, %c0_i32_1 : i32, i32, i32
  }
  func.func @transform_5(%arg0: i32) -> (i32, i32) {
    %c0_i32 = arith.constant 0 : i32
    %c0_i32_0 = arith.constant 0 : i32
    %c0_i32_1 = arith.constant 0 : i32
    return %c0_i32, %c0_i32_0 : i32, i32
  }
  func.func @transform_6(%arg0: i32) -> (i32, i32, i32) {
    %c0_i32 = arith.constant 0 : i32
    %c0_i32_0 = arith.constant 0 : i32
    %c0_i32_1 = arith.constant 0 : i32
    return %arg0, %c0_i32, %c0_i32_0 : i32, i32, i32
  }
}

</mosaic_0001>

<bundles_post_ra>
// kernel: net_forward.1
= control target key start
LH: loop header
LB: loop body
LE: loop exit
PB: predicated region body
PF: predicated region fallthrough
CT: control target
= control target key end

     0   :  { %s2706_s23 = smov 0   ;;  %s3305_s0 = inlined_call_operand.vmem [shape: f32[2,416,128], index: 0, kind: input, shape index: {}]   ;;  %s3306_s1 = inlined_call_operand.vmem [shape: f32[8,128], index: 1, kind: input, shape index: {}]   ;;  %s3307_s2 = inlined_call_operand.vmem [shape: bf16[3,128,128], index: 2, kind: input, shape index: {}]   ;;  %s3308_s3 = inlined_call_operand.vmem [shape: bf16[3,128,128], index: 3, kind: input, shape index: {}]   ;;  %s3309_s4 = inlined_call_operand.vmem [shape: f32[1,26,128], index: 4, kind: input, shape index: {}]   ;;  %s3310_s5 = inlined_call_operand.<no memory space> [shape: f32[1,1], index: 5, kind: input, shape index: {}]   ;;  %s3311_s6 = inlined_call_operand.vmem [shape: f32[2,1,1], index: 6, kind: output, shape index: {}]  }
   0x1   :  { %v11_v0 = vstv %s3310_s5 }
   0x2   :  { %12 = vst [vmem:[#allocation6] sm:$0x1] %v11_v0 }
   0x3 LB: > { %s2083_s24 = sadd.s32 4294967295, %s2664_s23   ;;  %p2087_p0 = scmp.ge.s32.totalorder %s2664_s23, 1  ;;  %s2664_s23 = sphi %s2706_s23, %s18_s23  }
   0x4   : > { %p214_p1 = scmp.lt.s32.totalorder %s2664_s23, 3 }
   0x6   : > { %p215_p2 = pnand %p2087_p0, %p214_p1 }
   0x7   : > { %v2605_v1 = vld [vmem:[%s3307_s2 + $0x40] sm:$0xff] (!%p215_p2)   ;;  %v2666_v2 = vmov (!%p215_p2), 0.0   ;;  %v2607_v4 = vld [vmem:[%s3307_s2 + $0x48] sm:$0xff] (!%p215_p2)   ;;  %vm2667_vm0 = vmmov (!%p215_p2), 0   ;;  %p242_p3 = scmp.lt.s32.totalorder (!%p215_p2), %s2083_s24, 1  ;;  %v2609_v6 = vld [vmem:[%s3307_s2 + $0x50] sm:$0xff] (!%p215_p2)  }
   0x8   : > { %218 = sbr.rel (%p215_p2) target bundleno = 958 (0x3be), region = 44  ;;  %2310 = vmatprep.subr.bf16.mxu0 (!%p215_p2), %v2666_v2  ;;  %259 = vst [vmem:[#allocation2] sm:$0xff] (!%p215_p2), %v2666_v2  ;;  %260 = vst [vmem:[#allocation2 + $0x198] sm:$0xff] (!%p215_p2), %v2666_v2  ;;  %2378 = vmatprep.subr.bf16.mxu1 (!%p215_p2), %v2666_v2  ;;  %v2606_v3 = vld [vmem:[%s3307_s2] sm:$0xff] (!%p215_p2)   ;;  %v2608_v5 = vld [vmem:[%s3307_s2 + $0x8] sm:$0xff] (!%p215_p2)   ;;  %vm2016_vm1 = vcmask (!%p215_p2), 1041408  }
   0x9   : > { %261 = vst [vmem:[#allocation2 + $0x1a0] sm:$0xff] (!%p215_p2), %v2666_v2  ;;  %1449 = vst [vmem:[#allocation4] sm:$0xff] (!%p215_p2), %v2666_v2  ;;  %2311 = vmatpush3.bf16.msra.mxu0 (!%p215_p2), %v2605_v1  ;;  %2326 = vmatprep.mubr.msk.bf16.mxu0 (!%p215_p2), %vm2667_vm0, %v2666_v2  ;;  %v2610_v7 = vld [vmem:[%s3307_s2 + $0x10] sm:$0xff] (!%p215_p2)   ;;  %v2611_v8 = vld [vmem:[%s3307_s2 + $0x58] sm:$0xff] (!%p215_p2)   ;;  %vm2034_vm2 = vcmask (!%p215_p2), 0  }
   0xa   : > { %1450 = vst [vmem:[#allocation4 + $0x60] sm:$0xff] (!%p215_p2), %v2666_v2  ;;  %1451 = vst [vmem:[#allocation4 + $0x68] sm:$0xff] (!%p215_p2), %v2666_v2  ;;  %2379 = vmatpush3.bf16.msra.mxu1 (!%p215_p2), %v2606_v3  ;;  %2312 = vmatprep.subr.bf16.mxu0 (!%p215_p2), %v2666_v2  ;;  %v2612_v9 = vld [vmem:[%s3307_s2 + $0x18] sm:$0xff] (!%p215_p2)   ;;  %v2613_v10 = vld [vmem:[%s3307_s2 + $0x60] sm:$0xff] (!%p215_p2)  }
   0xb   : > { %1452 = vst [vmem:[#allocation4 + $0x70] sm:$0xff] (!%p215_p2), %v2666_v2  ;;  %2380 = vmatprep.subr.bf16.mxu1 (!%p215_p2), %v2666_v2  ;;  %2394 = vmatprep.mubr.msk.bf16.mxu1 (!%p215_p2), %vm2667_vm0, %v2666_v2  ;;  %v2614_v11 = vld [vmem:[%s3307_s2 + $0x20] sm:$0xff] (!%p215_p2)   ;;  %v2615_v12 = vld [vmem:[%s3307_s2 + $0x68] sm:$0xff] (!%p215_p2)   ;;  %v2617_v28 = vld [vmem:[%s3307_s2 + $0x70] sm:$0xff] (!%p215_p2)  }
   0xc   : > { %v2779_v13 = vld [vmem:[%s3306_s1] ss:$0 sm:$0xff] (!%p215_p2)  ;;  %v2784_v14 = vld [vmem:[%s3306_s1 + $0x1] ss:$0 sm:$0xff] (!%p215_p2)  ;;  %v2616_v20 = vld [vmem:[%s3307_s2 + $0x28] sm:$0xff] (!%p215_p2)  }
   0xd   : > { %2313 = vmatpush3.bf16.msra.mxu0 (!%p215_p2), %v2607_v4  ;;  %v2618_v34 = vld [vmem:[%s3307_s2 + $0x30] sm:$0xff] (!%p215_p2)   ;;  %v2619_v52 = vld [vmem:[%s3307_s2 + $0x78] sm:$0xff] (!%p215_p2)  }
   0xe   : > { %2381 = vmatpush3.bf16.msra.mxu1 (!%p215_p2), %v2608_v5  ;;  %2314 = vmatprep.subr.bf16.mxu0 (!%p215_p2), %v2666_v2  ;;  %v2620_v57 = vld [vmem:[%s3307_s2 + $0x38] sm:$0xff] (!%p215_p2)  }
   0xf   : > { %s3313_s24 = smov (!%p242_p3, %s2083_s24), 1  ;;  %2382 = vmatprep.subr.bf16.mxu1 %v2666_v2 }
  0x10   : > { %s2594_s12 = smul.u32 416, %s3313_s24  ;;  %s249_s11 = scalar_lea.vmem %s3311_s6, %s3313_s24 }
  0x11   : > { %2315 = vmatpush3.bf16.msra.mxu0 %v2609_v6 }
  0x12   : > { %2383 = vmatpush3.bf16.msra.mxu1 %v2610_v7  ;;  %2316 = vmatprep.subr.bf16.mxu0 %v2666_v2  ;;  %s2763_s19 = scalar_lea.vmem %s3305_s0, %s2594_s12 }
  0x13   : > { %2384 = vmatprep.subr.bf16.mxu1 %v2666_v2  ;;  %v262_v15 = vld [vmem:[%s2763_s19] sm:$0xff]  ;;  %v263_v16 = vld [vmem:[%s2763_s19 + $0x8] sm:$0xff]  ;;  %v264_v17 = vld [vmem:[%s2763_s19 + $0x10] sm:$0xff] }
  0x14   : > { %v265_v18 = vld [vmem:[%s2763_s19 + $0x18] sm:$0xff]  ;;  %v318_v19 = vmul.f32 %v2779_v13, %v262_v15  ;;  %v319_v21 = vmul.f32 %v2779_v13, %v263_v16  ;;  %v320_v22 = vmul.f32 %v2779_v13, %v264_v17  ;;  %v266_v25 = vld [vmem:[%s2763_s19 + $0x20] sm:$0xff]  ;;  %v267_v26 = vld [vmem:[%s2763_s19 + $0x28] sm:$0xff] }
  0x15   : > { %2317 = vmatpush3.bf16.msra.mxu0 %v2611_v8  ;;  %v321_v23 = vmul.f32 %v2779_v13, %v265_v18  ;;  %v268_v27 = vld [vmem:[%s2763_s19 + $0x30] sm:$0xff]  ;;  %v269_v32 = vld [vmem:[%s2763_s19 + $0x38] sm:$0xff]  ;;  %v322_v33 = vmul.f32 %v2779_v13, %v266_v25  ;;  %v323_v35 = vmul.f32 %v2779_v13, %v267_v26  ;;  %v270_v38 = vld [vmem:[%s2763_s19 + $0x40] sm:$0xff] }
  0x16   : > { %2385 = vmatpush3.bf16.msra.mxu1 %v2612_v9  ;;  %2318 = vmatprep.subr.bf16.mxu0 %v2666_v2  ;;  %v374_v24 = vadd.f32 %v2784_v14, %v318_v19  ;;  %v375_v29 = vadd.f32 %v2784_v14, %v319_v21  ;;  %v376_v30 = vadd.f32 %v2784_v14, %v320_v22  ;;  %v271_v39 = vld [vmem:[%s2763_s19 + $0x48] sm:$0xff]  ;;  %v272_v41 = vld [vmem:[%s2763_s19 + $0x50] sm:$0xff]  ;;  %v273_v42 = vld [vmem:[%s2763_s19 + $0x58] sm:$0xff] }
  0x17   : > { %2386 = vmatprep.subr.bf16.mxu1 %v2666_v2  ;;  %v377_v31 = vadd.f32 %v2784_v14, %v321_v23  ;;  %v324_v36 = vmul.f32 %v2779_v13, %v268_v27  ;;  %v325_v37 = vmul.f32 %v2779_v13, %v269_v32  ;;  %v378_v40 = vadd.f32 %v2784_v14, %v322_v33  ;;  %v274_v45 = vld [vmem:[%s2763_s19 + $0x60] sm:$0xff]  ;;  %v275_v49 = vld [vmem:[%s2763_s19 + $0x68] sm:$0xff]  ;;  %v276_v50 = vld [vmem:[%s2763_s19 + $0x70] sm:$0xff] }
  0x18   : > { %426 = vst [vmem:[#allocation2 + $0x1] sm:$0xff] %v374_v24  ;;  %427 = vst [vmem:[#allocation2 + $0x9] sm:$0xff] %v375_v29  ;;  %v326_v43 = vmul.f32 %v2779_v13, %v270_v38  ;;  %v327_v44 = vmul.f32 %v2779_v13, %v271_v39  ;;  %v379_v46 = vadd.f32 %v2784_v14, %v323_v35  ;;  %v277_v51 = vld [vmem:[%s2763_s19 + $0x78] sm:$0xff]  ;;  %v278_v62 = vld [vmem:[%s2763_s19 + $0x80] sm:$0xff] }
  0x19   : > { %2319 = vmatpush3.bf16.msra.mxu0 %v2613_v10  ;;  %428 = vst [vmem:[#allocation2 + $0x11] sm:$0xff] %v376_v30  ;;  %429 = vst [vmem:[#allocation2 + $0x19] sm:$0xff] %v377_v31  ;;  %v380_v47 = vadd.f32 %v2784_v14, %v324_v36  ;;  %v381_v48 = vadd.f32 %v2784_v14, %v325_v37  ;;  %v328_v53 = vmul.f32 %v2779_v13, %v272_v41  ;;  %v279_v63 = vld [vmem:[%s2763_s19 + $0x88] sm:$0xff]  ;;  %v280_v0 = vld [vmem:[%s2763_s19 + $0x90] sm:$0xff] }
  0x1a   : > { %2387 = vmatpush3.bf16.msra.mxu1 %v2614_v11  ;;  %2320 = vmatprep.subr.bf16.mxu0 %v2666_v2  ;;  %430 = vst [vmem:[#allocation2 + $0x21] sm:$0xff] %v378_v40  ;;  %v329_v54 = vmul.f32 %v2779_v13, %v273_v42  ;;  %v382_v55 = vadd.f32 %v2784_v14, %v326_v43  ;;  %431 = vst [vmem:[#allocation2 + $0x29] sm:$0xff] %v379_v46  ;;  %v281_v4 = vld [vmem:[%s2763_s19 + $0x98] sm:$0xff]  ;;  %v282_v7 = vld [vmem:[%s2763_s19 + $0xa0] sm:$0xff] }
  0x1b   : > { %2388 = vmatprep.subr.bf16.mxu1 %v2666_v2  ;;  %v383_v56 = vadd.f32 %v2784_v14, %v327_v44  ;;  %432 = vst [vmem:[#allocation2 + $0x31] sm:$0xff] %v380_v47  ;;  %433 = vst [vmem:[#allocation2 + $0x39] sm:$0xff] %v381_v48  ;;  %v330_v58 = vmul.f32 %v2779_v13, %v274_v45  ;;  %v331_v59 = vmul.f32 %v2779_v13, %v275_v49  ;;  %v283_v8 = vld [vmem:[%s2763_s19 + $0xa8] sm:$0xff]  ;;  %v285_v15 = vld [vmem:[%s2763_s19 + $0xb8] sm:$0xff] }
  0x1c   : > { %v332_v60 = vmul.f32 %v2779_v13, %v276_v50  ;;  %v333_v61 = vmul.f32 %v2779_v13, %v277_v51  ;;  %v384_v1 = vadd.f32 %v2784_v14, %v328_v53  ;;  %v385_v3 = vadd.f32 %v2784_v14, %v329_v54  ;;  %434 = vst [vmem:[#allocation2 + $0x41] sm:$0xff] %v382_v55  ;;  %v2621_v16 = vld [vmem:[%s3307_s2 + $0x80] sm:$0xff]   ;;  %v288_v35 = vld [vmem:[%s2763_s19 + $0xd0] sm:$0xff]  ;;  %v289_v39 = vld [vmem:[%s2763_s19 + $0xd8] sm:$0xff] }
  0x1d   : > { %2321 = vmatpush3.bf16.msra.mxu0 %v2615_v12  ;;  %435 = vst [vmem:[#allocation2 + $0x49] sm:$0xff] %v383_v56  ;;  %v334_v5 = vmul.f32 %v2779_v13, %v278_v62  ;;  %v335_v6 = vmul.f32 %v2779_v13, %v279_v63  ;;  %v386_v9 = vadd.f32 %v2784_v14, %v330_v58  ;;  %v284_v12 = vld [vmem:[%s2763_s19 + $0xb0] sm:$0xff]  ;;  %v286_v21 = vld [vmem:[%s2763_s19 + $0xc0] sm:$0xff]  ;;  %v2622_v45 = vld [vmem:[%s3307_s2 + $0x88] sm:$0xff]  }
  0x1e   : > { %2389 = vmatpush3.bf16.msra.mxu1 %v2616_v20  ;;  %2322 = vmatprep.subr.bf16.mxu0 %v2666_v2  ;;  %v387_v10 = vadd.f32 %v2784_v14, %v331_v59  ;;  %v388_v11 = vadd.f32 %v2784_v14, %v332_v60  ;;  %436 = vst [vmem:[#allocation2 + $0x51] sm:$0xff] %v384_v1  ;;  %437 = vst [vmem:[#allocation2 + $0x59] sm:$0xff] %v385_v3  ;;  %v290_v51 = vld [vmem:[%s2763_s19 + $0xe0] sm:$0xff]  ;;  %v293_v59 = vld [vmem:[%s2763_s19 + $0xf8] sm:$0xff] }
  0x1f   : > { %2390 = vmatprep.subr.bf16.mxu1 %v2666_v2  ;;  %v389_v17 = vadd.f32 %v2784_v14, %v333_v61  ;;  %v336_v18 = vmul.f32 %v2779_v13, %v280_v0  ;;  %v337_v19 = vmul.f32 %v2779_v13, %v281_v4  ;;  %v390_v20 = vadd.f32 %v2784_v14, %v334_v5  ;;  %v559_v22 = vld [vmem:[#allocation2 + $0x1] ss:$2 sm:$0xff]  ;;  %v478_v24 = vld [vmem:[#allocation2] ss:$2 sm:$0xff] }
  0x20   : > { %v561_v23 = vld [vmem:[#allocation2 + $0x11] ss:$2 sm:$0xff]  ;;  %438 = vst [vmem:[#allocation2 + $0x61] sm:$0xff] %v386_v9  ;;  %439 = vst [vmem:[#allocation2 + $0x69] sm:$0xff] %v387_v10  ;;  %v391_v25 = vadd.f32 %v2784_v14, %v335_v6  ;;  %v338_v26 = vmul.f32 %v2779_v13, %v282_v7  ;;  %v339_v27 = vmul.f32 %v2779_v13, %v283_v8  ;;  %v480_v30 = vld [vmem:[#allocation2 + $0x10] ss:$2 sm:$0xff] }
  0x21   : > { %2323 = vmatpush3.bf16.msra.mxu0 %v2617_v28  ;;  %440 = vst [vmem:[#allocation2 + $0x71] sm:$0xff] %v388_v11  ;;  %v340_v28 = vmul.f32 %v2779_v13, %v284_v12  ;;  %v610_v29 = vpack.c.bf16 %v561_v23, %v559_v22  ;;  %441 = vst [vmem:[#allocation2 + $0x79] sm:$0xff] %v389_v17  ;;  %v392_v31 = vadd.f32 %v2784_v14, %v336_v18  ;;  %v563_v44 = vld [vmem:[#allocation2 + $0x21] ss:$2 sm:$0xff]  ;;  %v482_v53 = vld [vmem:[#allocation2 + $0x20] ss:$2 sm:$0xff] }
  0x22   : > { %2391 = vmatpush3.bf16.msra.mxu1 %v2618_v34  ;;  %2324 = vmatprep.subr.bf16.mxu0 %v2666_v2  ;;  %v393_v32 = vadd.f32 %v2784_v14, %v337_v19  ;;  %442 = vst [vmem:[#allocation2 + $0x81] sm:$0xff] %v390_v20  ;;  %v341_v33 = vmul.f32 %v2779_v13, %v285_v15  ;;  %v287_v34 = vld [vmem:[%s2763_s19 + $0xc8] sm:$0xff]  ;;  %443 = vst [vmem:[#allocation2 + $0x89] sm:$0xff] %v391_v25  ;;  %v565_v48 = vld [vmem:[#allocation2 + $0x31] ss:$2 sm:$0xff] }
  0x23   : > { %2392 = vmatprep.subr.bf16.mxu1 %v2666_v2  ;;  %v529_v36 = vpack.c.bf16 %v480_v30, %v478_v24  ;;  %v394_v37 = vadd.f32 %v2784_v14, %v338_v26  ;;  %v395_v38 = vadd.f32 %v2784_v14, %v339_v27  ;;  %444 = vst [vmem:[#allocation2 + $0x91] sm:$0xff] %v392_v31  ;;  %v484_v54 = vld [vmem:[#allocation2 + $0x30] ss:$2 sm:$0xff]  ;;  %v294_v1 = vld [vmem:[%s2763_s19 + $0x100] sm:$0xff]  ;;  %v295_v6 = vld [vmem:[%s2763_s19 + $0x108] sm:$0xff] }
  0x24   : > { %445 = vst [vmem:[#allocation2 + $0x99] sm:$0xff] %v393_v32  ;;  %v396_v40 = vadd.f32 %v2784_v14, %v340_v28  ;;  %v397_v41 = vadd.f32 %v2784_v14, %v341_v33  ;;  %v342_v42 = vmul.f32 %v2779_v13, %v286_v21  ;;  %v343_v43 = vmul.f32 %v2779_v13, %v287_v34  ;;  %v2623_v7 = vld [vmem:[%s3307_s2 + $0x90] sm:$0xff]   ;;  %v297_v12 = vld [vmem:[%s2763_s19 + $0x118] sm:$0xff]  ;;  %v298_v23 = vld [vmem:[%s2763_s19 + $0x120] sm:$0xff] }
  0x25   : > { %2325 = vmatpush3.bf16.msra.mxu0 %v2619_v52  ;;  %446 = vst [vmem:[#allocation2 + $0xa1] sm:$0xff] %v394_v37  ;;  %447 = vst [vmem:[#allocation2 + $0xa9] sm:$0xff] %v395_v38  ;;  %v344_v46 = vmul.f32 %v2779_v13, %v288_v35  ;;  %v345_v47 = vmul.f32 %v2779_v13, %v289_v39  ;;  %v291_v52 = vld [vmem:[%s2763_s19 + $0xe8] sm:$0xff]  ;;  %v346_v58 = vmul.f32 %v2779_v13, %v290_v51  ;;  %v296_v9 = vld [vmem:[%s2763_s19 + $0x110] sm:$0xff] }
  0x26   : > { %2393 = vmatpush3.bf16.msra.mxu1 %v2620_v57  ;;  %2446 = vmatprep.subr.bf16.mxu0 %v2666_v2  ;;  %448 = vst [vmem:[#allocation2 + $0xb1] sm:$0xff] %v396_v40  ;;  %449 = vst [vmem:[#allocation2 + $0xb9] sm:$0xff] %v397_v41  ;;  %v398_v49 = vadd.f32 %v2784_v14, %v342_v42  ;;  %v399_v50 = vadd.f32 %v2784_v14, %v343_v43  ;;  %v292_v57 = vld [vmem:[%s2763_s19 + $0xf0] sm:$0xff]  ;;  %v2624_v17 = vld [vmem:[%s3307_s2 + $0x98] sm:$0xff]  }
  0x27   : > { %v400_v55 = vadd.f32 %v2784_v14, %v344_v46  ;;  %v401_v56 = vadd.f32 %v2784_v14, %v345_v47  ;;  %v347_v60 = vmul.f32 %v2779_v13, %v291_v52  ;;  %v348_v61 = vmul.f32 %v2779_v13, %v292_v57  ;;  %v569_v21 = vld [vmem:[#allocation2 + $0x51] ss:$2 sm:$0xff]  ;;  %v486_v24 = vld [vmem:[#allocation2 + $0x40] ss:$2 sm:$0xff]  ;;  %v488_v25 = vld [vmem:[#allocation2 + $0x50] ss:$2 sm:$0xff] }
  0x28   : > { %2327 = vmatmul.mubr.bf16.vlgmr.msra.gmra.mrb[0].mxu0 %v610_v29  ;;  %450 = vst [vmem:[#allocation2 + $0xc1] sm:$0xff] %v398_v49  ;;  %451 = vst [vmem:[#allocation2 + $0xc9] sm:$0xff] %v399_v50  ;;  %v611_v62 = vpack.c.bf16 %v565_v48, %v563_v44  ;;  %v349_v63 = vmul.f32 %v2779_v13, %v293_v59  ;;  %v402_v0 = vadd.f32 %v2784_v14, %v346_v58  ;;  %v299_v27 = vld [vmem:[%s2763_s19 + $0x128] sm:$0xff]  ;;  %v300_v29 = vld [vmem:[%s2763_s19 + $0x130] sm:$0xff] }
  0x29   : > { %2395 = vmatmul.mubr.bf16.vlgmr.msra.gmra.mrb[0].mxu1 %v529_v36  ;;  %2447 = vmatpush3.bf16.msra.mxu0 %v2621_v16  ;;  %452 = vst [vmem:[#allocation2 + $0xd1] sm:$0xff] %v400_v55  ;;  %453 = vst [vmem:[#allocation2 + $0xd9] sm:$0xff] %v401_v56  ;;  %v530_v3 = vpack.c.bf16 %v484_v54, %v482_v53  ;;  %v403_v4 = vadd.f32 %v2784_v14, %v347_v60  ;;  %v567_v16 = vld [vmem:[#allocation2 + $0x41] ss:$2 sm:$0xff]  ;;  %v301_v32 = vld [vmem:[%s2763_s19 + $0x138] sm:$0xff] }
  0x2a   : > { %2330 = vmatprep.mubr.msk.bf16.mxu0 %vm2667_vm0, %v2666_v2  ;;  %2398 = vmatprep.mubr.msk.bf16.mxu1 %vm2667_vm0, %v2666_v2  ;;  %v404_v5 = vadd.f32 %v2784_v14, %v348_v61  ;;  %v405_v8 = vadd.f32 %v2784_v14, %v349_v63  ;;  %454 = vst [vmem:[#allocation2 + $0xe1] sm:$0xff] %v402_v0  ;;  %v302_v38 = vld [vmem:[%s2763_s19 + $0x140] sm:$0xff]  ;;  %v303_v39 = vld [vmem:[%s2763_s19 + $0x148] sm:$0xff]  ;;  %v304_v42 = vld [vmem:[%s2763_s19 + $0x150] sm:$0xff] }
  0x2b   : > { %2448 = vmatprep.subr.bf16.mxu0 %v2666_v2  ;;  %v350_v10 = vmul.f32 %v2779_v13, %v294_v1  ;;  %v351_v11 = vmul.f32 %v2779_v13, %v295_v6  ;;  %455 = vst [vmem:[#allocation2 + $0xe9] sm:$0xff] %v403_v4  ;;  %v352_v15 = vmul.f32 %v2779_v13, %v296_v9  ;;  %v2625_v40 = vld [vmem:[%s3307_s2 + $0xa0] sm:$0xff]   ;;  %v305_v48 = vld [vmem:[%s2763_s19 + $0x158] sm:$0xff]  ;;  %v307_v53 = vld [vmem:[%s2763_s19 + $0x168] sm:$0xff] }
  0x2c   : > { %456 = vst [vmem:[#allocation2 + $0xf1] sm:$0xff] %v404_v5  ;;  %457 = vst [vmem:[#allocation2 + $0xf9] sm:$0xff] %v405_v8  ;;  %v353_v18 = vmul.f32 %v2779_v13, %v297_v12  ;;  %v354_v28 = vmul.f32 %v2779_v13, %v298_v23  ;;  %v355_v30 = vmul.f32 %v2779_v13, %v299_v27  ;;  %v490_v46 = vld [vmem:[#allocation2 + $0x60] ss:$2 sm:$0xff]  ;;  %v308_v54 = vld [vmem:[%s2763_s19 + $0x170] sm:$0xff] }
  0x2d   : > { %2449 = vmatpush3.bf16.msra.mxu0 %v2622_v45  ;;  %v406_v19 = vadd.f32 %v2784_v14, %v350_v10  ;;  %v407_v20 = vadd.f32 %v2784_v14, %v351_v11  ;;  %v408_v22 = vadd.f32 %v2784_v14, %v352_v15  ;;  %v612_v31 = vpack.c.bf16 %v569_v21, %v567_v16  ;;  %v571_v45 = vld [vmem:[#allocation2 + $0x61] ss:$2 sm:$0xff]  ;;  %v573_v55 = vld [vmem:[#allocation2 + $0x71] ss:$2 sm:$0xff]  ;;  %v492_v56 = vld [vmem:[#allocation2 + $0x70] ss:$2 sm:$0xff] }
  0x2e   : > { %2450 = vmatprep.subr.bf16.mxu0 %v2666_v2  ;;  %v409_v26 = vadd.f32 %v2784_v14, %v353_v18  ;;  %v356_v33 = vmul.f32 %v2779_v13, %v300_v29  ;;  %v410_v34 = vadd.f32 %v2784_v14, %v354_v28  ;;  %v531_v35 = vpack.c.bf16 %v488_v25, %v486_v24  ;;  %v306_v52 = vld [vmem:[%s2763_s19 + $0x160] sm:$0xff]  ;;  %v309_v59 = vld [vmem:[%s2763_s19 + $0x178] sm:$0xff]  ;;  %v2626_v61 = vld [vmem:[%s3307_s2 + $0xa8] sm:$0xff]  }
  0x2f   : > { %458 = vst [vmem:[#allocation2 + $0x101] sm:$0xff] %v406_v19  ;;  %459 = vst [vmem:[#allocation2 + $0x109] sm:$0xff] %v407_v20  ;;  %v357_v36 = vmul.f32 %v2779_v13, %v301_v32  ;;  %v411_v37 = vadd.f32 %v2784_v14, %v355_v30  ;;  %v358_v43 = vmul.f32 %v2779_v13, %v302_v38  ;;  %v310_v4 = vld [vmem:[%s2763_s19 + $0x180] sm:$0xff]  ;;  %v311_v9 = vld [vmem:[%s2763_s19 + $0x188] sm:$0xff] }
  0x30   : > { %2331 = vmatmul.mubr.bf16.gmra.mrb[4].mxu0 %v611_v62  ;;  %460 = vst [vmem:[#allocation2 + $0x111] sm:$0xff] %v408_v22  ;;  %461 = vst [vmem:[#allocation2 + $0x119] sm:$0xff] %v409_v26  ;;  %v412_v41 = vadd.f32 %v2784_v14, %v356_v33  ;;  %v359_v44 = vmul.f32 %v2779_v13, %v303_v39  ;;  %v360_v49 = vmul.f32 %v2779_v13, %v304_v42  ;;  %v312_v10 = vld [vmem:[%s2763_s19 + $0x190] sm:$0xff]  ;;  %v313_v11 = vld [vmem:[%s2763_s19 + $0x198] sm:$0x7] }
  0x31   : > { %2399 = vmatmul.mubr.bf16.gmra.mrb[4].mxu1 %v530_v3  ;;  %2334 = vmatprep.mubr.msk.bf16.mxu0 %vm2667_vm0, %v2666_v2  ;;  %462 = vst [vmem:[#allocation2 + $0x121] sm:$0xff] %v410_v34  ;;  %v413_v47 = vadd.f32 %v2784_v14, %v357_v36  ;;  %463 = vst [vmem:[#allocation2 + $0x129] sm:$0xff] %v411_v37  ;;  %v361_v50 = vmul.f32 %v2779_v13, %v305_v48  ;;  %v2627_v18 = vld [vmem:[%s3307_s2 + $0xb0] sm:$0xff]   ;;  %v575_v24 = vld [vmem:[#allocation2 + $0x81] ss:$2 sm:$0xff] }
  0x32   : > { %2402 = vmatprep.mubr.msk.bf16.mxu1 %vm2667_vm0, %v2666_v2  ;;  %2451 = vmatpush3.bf16.msra.mxu0 %v2623_v7  ;;  %464 = vst [vmem:[#allocation2 + $0x131] sm:$0xff] %v412_v41  ;;  %v414_v51 = vadd.f32 %v2784_v14, %v358_v43  ;;  %v415_v57 = vadd.f32 %v2784_v14, %v359_v44  ;;  %v577_v25 = vld [vmem:[#allocation2 + $0x91] ss:$2 sm:$0xff]  ;;  %v496_v26 = vld [vmem:[#allocation2 + $0x90] ss:$2 sm:$0xff] }
  0x33   : > { %2452 = vmatprep.subr.bf16.mxu0 %v2666_v2  ;;  %465 = vst [vmem:[#allocation2 + $0x139] sm:$0xff] %v413_v47  ;;  %v416_v58 = vadd.f32 %v2784_v14, %v360_v49  ;;  %v362_v60 = vmul.f32 %v2779_v13, %v306_v52  ;;  %v417_v62 = vadd.f32 %v2784_v14, %v361_v50  ;;  %v2628_v27 = vld [vmem:[%s3307_s2 + $0xb8] sm:$0xff]   ;;  %v579_v29 = vld [vmem:[#allocation2 + $0xa1] ss:$2 sm:$0xff]  ;;  %v502_v36 = vld [vmem:[#allocation2 + $0xc0] ss:$2 sm:$0xff] }
  0x34   : > { %466 = vst [vmem:[#allocation2 + $0x141] sm:$0xff] %v414_v51  ;;  %v363_v63 = vmul.f32 %v2779_v13, %v307_v53  ;;  %v364_v0 = vmul.f32 %v2779_v13, %v308_v54  ;;  %467 = vst [vmem:[#allocation2 + $0x149] sm:$0xff] %v415_v57  ;;  %v365_v1 = vmul.f32 %v2779_v13, %v309_v59  ;;  %v581_v30 = vld [vmem:[#allocation2 + $0xb1] ss:$2 sm:$0xff]  ;;  %v500_v32 = vld [vmem:[#allocation2 + $0xb0] ss:$2 sm:$0xff] }
  0x35   : > { %468 = vst [vmem:[#allocation2 + $0x151] sm:$0xff] %v416_v58  ;;  %v418_v3 = vadd.f32 %v2784_v14, %v362_v60  ;;  %v613_v5 = vpack.c.bf16 %v573_v55, %v571_v45  ;;  %v532_v6 = vpack.c.bf16 %v492_v56, %v490_v46  ;;  %469 = vst [vmem:[#allocation2 + $0x159] sm:$0xff] %v417_v62  ;;  %v585_v37 = vld [vmem:[#allocation2 + $0xd1] ss:$2 sm:$0xff]  ;;  %v504_v38 = vld [vmem:[#allocation2 + $0xd0] ss:$2 sm:$0xff] }
  0x36   : > { %2453 = vmatpush3.bf16.msra.mxu0 %v2624_v17  ;;  %v419_v7 = vadd.f32 %v2784_v14, %v363_v63  ;;  %v420_v8 = vadd.f32 %v2784_v14, %v364_v0  ;;  %v421_v12 = vadd.f32 %v2784_v14, %v365_v1  ;;  %v366_v15 = vmul.f32 %v2779_v13, %v310_v4  ;;  %v587_v41 = vld [vmem:[#allocation2 + $0xe1] ss:$2 sm:$0xff]  ;;  %v589_v42 = vld [vmem:[#allocation2 + $0xf1] ss:$2 sm:$0xff]  ;;  %v506_v43 = vld [vmem:[#allocation2 + $0xe0] ss:$2 sm:$0xff] }
  0x37   : > { %2454 = vmatprep.subr.bf16.mxu0 %v2666_v2  ;;  %470 = vst [vmem:[#allocation2 + $0x161] sm:$0xff] %v418_v3  ;;  %v367_v16 = vmul.f32 %v2779_v13, %v311_v9  ;;  %v368_v17 = vmul.f32 %v2779_v13, %v312_v10  ;;  %v369_v19 = vmul.f32 %v2779_v13, %v313_v11  ;;  %v494_v13 = vld [vmem:[#allocation2 + $0x80] ss:$2 sm:$0xff]  ;;  %v508_v44 = vld [vmem:[#allocation2 + $0xf0] ss:$2 sm:$0xff] }
  0x38   : > { %2335 = vmatmul.mubr.bf16.gmra.mrb[8].mxu0 %v612_v31  ;;  %471 = vst [vmem:[#allocation2 + $0x169] sm:$0xff] %v419_v7  ;;  %472 = vst [vmem:[#allocation2 + $0x171] sm:$0xff] %v420_v8  ;;  %v422_v20 = vadd.f32 %v2784_v14, %v366_v15  ;;  %v533_v28 = vpack.c.bf16 %v496_v26, %v494_v13  ;;  %v498_v31 = vld [vmem:[#allocation2 + $0xa0] ss:$2 sm:$0xff]  ;;  %v615_v33 = vpack.c.bf16 %v581_v30, %v579_v29  ;;  %v591_v47 = vld [vmem:[#allocation2 + $0x101] ss:$2 sm:$0xff] }
  0x39   : > { %2403 = vmatmul.mubr.bf16.gmra.mrb[8].mxu1 %v531_v35  ;;  %2338 = vmatprep.mubr.msk.bf16.mxu0 %vm2667_vm0, %v2666_v2  ;;  %473 = vst [vmem:[#allocation2 + $0x179] sm:$0xff] %v421_v12  ;;  %v423_v21 = vadd.f32 %v2784_v14, %v367_v16  ;;  %v424_v22 = vadd.f32 %v2784_v14, %v368_v17  ;;  %v583_v35 = vld [vmem:[#allocation2 + $0xc1] ss:$2 sm:$0xff]  ;;  %v593_v48 = vld [vmem:[#allocation2 + $0x111] ss:$2 sm:$0xff] }
  0x3a   : > { %2406 = vmatprep.mubr.msk.bf16.mxu1 %vm2667_vm0, %v2666_v2  ;;  %2455 = vmatpush3.bf16.msra.mxu0 %v2625_v40  ;;  %v425_v23 = vadd.f32 %v2784_v14, %v369_v19  ;;  %474 = vst [vmem:[#allocation2 + $0x181] sm:$0xff] %v422_v20  ;;  %v614_v14 = vpack.c.bf16 %v577_v25, %v575_v24  ;;  %v510_v49 = vld [vmem:[#allocation2 + $0x100] ss:$2 sm:$0xff]  ;;  %v512_v50 = vld [vmem:[#allocation2 + $0x110] ss:$2 sm:$0xff] }
  0x3b   : > { %2456 = vmatprep.subr.bf16.mxu0 %v2666_v2  ;;  %475 = vst [vmem:[#allocation2 + $0x189] sm:$0xff] %v423_v21  ;;  %476 = vst [vmem:[#allocation2 + $0x191] sm:$0xff] %v424_v22  ;;  %v534_v34 = vpack.c.bf16 %v500_v32, %v498_v31  ;;  %v616_v39 = vpack.c.bf16 %v585_v37, %v583_v35  ;;  %v535_v40 = vpack.c.bf16 %v504_v38, %v502_v36  ;;  %v595_v53 = vld [vmem:[#allocation2 + $0x121] ss:$2 sm:$0xff]  ;;  %v597_v54 = vld [vmem:[#allocation2 + $0x131] ss:$2 sm:$0xff] }
  0x3c   : > { %477 = vst [vmem:[#allocation2 + $0x199] sm:$0x7] %v425_v23  ;;  %v617_v45 = vpack.c.bf16 %v589_v42, %v587_v41  ;;  %v536_v46 = vpack.c.bf16 %v508_v44, %v506_v43  ;;  %v618_v51 = vpack.c.bf16 %v593_v48, %v591_v47  ;;  %v537_v52 = vpack.c.bf16 %v512_v50, %v510_v49  ;;  %v514_v55 = vld [vmem:[#allocation2 + $0x120] ss:$2 sm:$0xff]  ;;  %v516_v56 = vld [vmem:[#allocation2 + $0x130] ss:$2 sm:$0xff] }
  0x3d   : > { %v619_v57 = vpack.c.bf16 %v597_v54, %v595_v53  ;;  %v538_v58 = vpack.c.bf16 %v516_v56, %v514_v55  ;;  %v599_v59 = vld [vmem:[#allocation2 + $0x141] ss:$2 sm:$0xff]  ;;  %v601_v60 = vld [vmem:[#allocation2 + $0x151] ss:$2 sm:$0xff]  ;;  %v520_v62 = vld [vmem:[#allocation2 + $0x150] ss:$2 sm:$0xff] }
  0x3e   : > { %2457 = vmatpush3.bf16.msra.mxu0 %v2626_v61  ;;  %v518_v61 = vld [vmem:[#allocation2 + $0x140] ss:$2 sm:$0xff]  ;;  %v620_v63 = vpack.c.bf16 %v601_v60, %v599_v59 }
  0x3f   : > { %2458 = vmatprep.subr.bf16.mxu0 %v2666_v2  ;;  %v539_v0 = vpack.c.bf16 %v520_v62, %v518_v61  ;;  %v603_v1 = vld [vmem:[#allocation2 + $0x161] ss:$2 sm:$0xff]  ;;  %v522_v4 = vld [vmem:[#allocation2 + $0x160] ss:$2 sm:$0xff] }
  0x40   : > { %2339 = vmatmul.mubr.bf16.gmra.mrb[12].mxu0 %v613_v5  ;;  %v605_v3 = vld [vmem:[#allocation2 + $0x171] ss:$2 sm:$0xff]  ;;  %v524_v5 = vld [vmem:[#allocation2 + $0x170] ss:$2 sm:$0xff]  ;;  %v2657_v16 = vld [vmem:[#allocation2 + $0x1a0] sm:$0xff] }
  0x41   : > { %2407 = vmatmul.mubr.bf16.gmra.mrb[12].mxu1 %v532_v6  ;;  %2342 = vmatprep.mubr.msk.bf16.mxu0 %vm2667_vm0, %v2666_v2  ;;  %v621_v6 = vpack.c.bf16 %v605_v3, %v603_v1  ;;  %v540_v7 = vpack.c.bf16 %v524_v5, %v522_v4  ;;  %v1011_v17 = vld [vmem:[#allocation2 + $0x2] ss:$2 sm:$0xff]  ;;  %v1017_v21 = vld [vmem:[#allocation2 + $0x32] ss:$2 sm:$0xff] }
  0x42   : > { %2410 = vmatprep.mubr.msk.bf16.mxu1 %vm2667_vm0, %v2666_v2  ;;  %2459 = vmatpush3.bf16.msra.mxu0 %v2627_v18  ;;  %v607_v8 = vld [vmem:[#allocation2 + $0x181] ss:$2 sm:$0xff]  ;;  %v526_v10 = vld [vmem:[#allocation2 + $0x180] ss:$2 sm:$0xff] }
  0x43   : > { %2460 = vmatprep.subr.bf16.mxu0 %v2666_v2  ;;  %v609_v9 = vld [vmem:[#allocation2 + $0x191] ss:$2 sm:$0xff]  ;;  %v528_v11 = vld [vmem:[#allocation2 + $0x190] ss:$2 sm:$0xff]  ;;  %v2630_v62 = vld [vmem:[%s3308_s3 + $0x48] sm:$0xff]  }
  0x44   : > { %v622_v12 = vpack.c.bf16 %v609_v9, %v607_v8  ;;  %v541_v15 = vpack.c.bf16 %v528_v11, %v526_v10  ;;  %v1013_v18 = vld [vmem:[#allocation2 + $0x12] ss:$2 sm:$0xff]  ;;  %v1015_v20 = vld [vmem:[#allocation2 + $0x22] ss:$2 sm:$0xff] }
  0x45   : > { %v1062_v19 = vpack.c.bf16 %v1013_v18, %v1011_v17  ;;  %v1063_v22 = vpack.c.bf16 %v1017_v21, %v1015_v20  ;;  %v1021_v23 = vld [vmem:[#allocation2 + $0x52] ss:$2 sm:$0xff]  ;;  %v1023_v25 = vld [vmem:[#allocation2 + $0x62] ss:$2 sm:$0xff] }
  0x46   : > { %2461 = vmatpush3.bf16.msra.mxu0 %v2628_v27  ;;  %v1025_v13 = vld [vmem:[#allocation2 + $0x72] ss:$2 sm:$0xff]  ;;  %v1027_v27 = vld [vmem:[#allocation2 + $0x82] ss:$2 sm:$0xff] }
  0x47   : > { %v1065_v26 = vpack.c.bf16 %v1025_v13, %v1023_v25  ;;  %v1031_v29 = vld [vmem:[#allocation2 + $0xa2] ss:$2 sm:$0xff]  ;;  %v1033_v30 = vld [vmem:[#allocation2 + $0xb2] ss:$2 sm:$0xff] }
  0x48   : > { %2343 = vmatmul.mubr.bf16.gmra.mrb[16].mxu0 %v614_v14  ;;  %v1029_v14 = vld [vmem:[#allocation2 + $0x92] ss:$2 sm:$0xff]  ;;  %v1067_v31 = vpack.c.bf16 %v1033_v30, %v1031_v29  ;;  %v1035_v32 = vld [vmem:[#allocation2 + $0xc2] ss:$2 sm:$0xff] }
  0x49   : > { %2411 = vmatmul.mubr.bf16.gmra.mrb[16].mxu1 %v533_v28  ;;  %2346 = vmatprep.mubr.msk.bf16.mxu0 %vm2667_vm0, %v2666_v2  ;;  %v1066_v28 = vpack.c.bf16 %v1029_v14, %v1027_v27  ;;  %v1039_v35 = vld [vmem:[#allocation2 + $0xe2] ss:$2 sm:$0xff]  ;;  %v1041_v36 = vld [vmem:[#allocation2 + $0xf2] ss:$2 sm:$0xff] }
  0x4a   : > { %2414 = vmatprep.mubr.msk.bf16.mxu1 %vm2667_vm0, %v2666_v2  ;;  %v1069_v37 = vpack.c.bf16 %v1041_v36, %v1039_v35  ;;  %v1043_v38 = vld [vmem:[#allocation2 + $0x102] ss:$2 sm:$0xff]  ;;  %v1049_v42 = vld [vmem:[#allocation2 + $0x132] ss:$2 sm:$0xff] }
  0x4b   : > { %v1047_v41 = vld [vmem:[#allocation2 + $0x122] ss:$2 sm:$0xff]  ;;  %v1057_v48 = vld [vmem:[#allocation2 + $0x172] ss:$2 sm:$0xff] }
  0x4c   : > { %v1071_v43 = vpack.c.bf16 %v1049_v42, %v1047_v41  ;;  %v1051_v44 = vld [vmem:[#allocation2 + $0x142] ss:$2 sm:$0xff] }
  0x4d   : > { %v1055_v47 = vld [vmem:[#allocation2 + $0x162] ss:$2 sm:$0xff] }
  0x4e   : > { %v1073_v49 = vpack.c.bf16 %v1057_v48, %v1055_v47  ;;  %v1059_v50 = vld [vmem:[#allocation2 + $0x182] ss:$2 sm:$0xff] }
  0x50   : > { %2347 = vmatmul.mubr.bf16.gmra.mrb[20].mxu0 %v615_v33  ;;  %v1037_v33 = vld [vmem:[#allocation2 + $0xd2] ss:$2 sm:$0xff] }
  0x51   : > { %2415 = vmatmul.mubr.bf16.gmra.mrb[20].mxu1 %v534_v34  ;;  %2350 = vmatprep.mubr.msk.bf16.mxu0 %vm2667_vm0, %v2666_v2  ;;  %v1068_v34 = vpack.c.bf16 %v1037_v33, %v1035_v32  ;;  %v2632_v32 = vld [vmem:[%s3308_s3 + $0x58] sm:$0xff]  }
  0x52   : > { %2418 = vmatprep.mubr.msk.bf16.mxu1 %vm2667_vm0, %v2666_v2 }
  0x58   : > { %2351 = vmatmul.mubr.bf16.gmra.mrb[24].mxu0 %v616_v39  ;;  %v1045_v39 = vld [vmem:[#allocation2 + $0x112] ss:$2 sm:$0xff] }
  0x59   : > { %2419 = vmatmul.mubr.bf16.gmra.mrb[24].mxu1 %v535_v40  ;;  %2354 = vmatprep.mubr.msk.bf16.mxu0 %vm2667_vm0, %v2666_v2  ;;  %v1070_v40 = vpack.c.bf16 %v1045_v39, %v1043_v38 }
  0x5a   : > { %2422 = vmatprep.mubr.msk.bf16.mxu1 %vm2667_vm0, %v2666_v2 }
  0x60   : > { %2355 = vmatmul.mubr.bf16.gmra.mrb[28].mxu0 %v617_v45  ;;  %v1053_v45 = vld [vmem:[#allocation2 + $0x152] ss:$2 sm:$0xff] }
  0x61   : > { %2423 = vmatmul.mubr.bf16.gmra.mrb[28].mxu1 %v536_v46  ;;  %2358 = vmatprep.mubr.msk.bf16.mxu0 %vm2667_vm0, %v2666_v2  ;;  %v1072_v46 = vpack.c.bf16 %v1053_v45, %v1051_v44 }
  0x62   : > { %2426 = vmatprep.mubr.msk.bf16.mxu1 %vm2667_vm0, %v2666_v2 }
  0x68   : > { %2359 = vmatmul.mubr.bf16.gmra.mrb[32].mxu0 %v618_v51  ;;  %v1061_v51 = vld [vmem:[#allocation2 + $0x192] ss:$2 sm:$0xff] }
  0x69   : > { %2427 = vmatmul.mubr.bf16.gmra.mrb[32].mxu1 %v537_v52  ;;  %2362 = vmatprep.mubr.msk.bf16.mxu0 %vm2667_vm0, %v2666_v2  ;;  %v2629_v52 = vld [vmem:[%s3308_s3 + $0x40] sm:$0xff]   ;;  %v1074_v53 = vpack.c.bf16 %v1061_v51, %v1059_v50 }
  0x6a   : > { %2430 = vmatprep.mubr.msk.bf16.mxu1 %vm2667_vm0, %v2666_v2  ;;  %2514 = vmatprep.subr.bf16.mxu1 %v2629_v52 }
  0x6b   : > { %2515 = vmatpush3.bf16.msra.mxu1 %v2629_v52 }
  0x6c   : > { %2516 = vmatprep.subr.bf16.mxu1 %v2630_v62 }
  0x6f   : > { %2517 = vmatpush3.bf16.msra.mxu1 %v2630_v62 }
  0x70   : > { %2363 = vmatmul.mubr.bf16.gmra.mrb[36].mxu0 %v619_v57 }
  0x71   : > { %2431 = vmatmul.mubr.bf16.gmra.mrb[36].mxu1 %v538_v58  ;;  %2366 = vmatprep.mubr.msk.bf16.mxu0 %vm2667_vm0, %v2666_v2 }
  0x72   : > { %2434 = vmatprep.mubr.msk.bf16.mxu1 %vm2667_vm0, %v2666_v2 }
  0x78   : > { %2367 = vmatmul.mubr.bf16.gmra.mrb[40].mxu0 %v620_v63 }
  0x79   : > { %2435 = vmatmul.mubr.bf16.gmra.mrb[40].mxu1 %v539_v0  ;;  %2370 = vmatprep.mubr.msk.bf16.mxu0 %vm2667_vm0, %v2666_v2 }
  0x7a   : > { %2438 = vmatprep.mubr.msk.bf16.mxu1 %vm2667_vm0, %v2666_v2 }
  0x80   : > { %2371 = vmatmul.mubr.bf16.gmra.mrb[44].mxu0 %v621_v6 }
  0x81   : > { %2439 = vmatmul.mubr.bf16.gmra.mrb[44].mxu1 %v540_v7  ;;  %2374 = vmatprep.mubr.msk.bf16.mxu0 %vm2667_vm0, %v2666_v2 }
  0x82   : > { %2442 = vmatprep.mubr.msk.bf16.mxu1 %vm2667_vm0, %v2666_v2  ;;  %v1019_v2 = vld [vmem:[#allocation2 + $0x42] ss:$2 sm:$0xff] }
  0x83   : > { %v1064_v24 = vpack.c.bf16 %v1021_v23, %v1019_v2 }
  0x88   : > { %2375 = vmatmul.mubr.bf16.gmra.mrb[48].mxu0 %v622_v12 }
  0x89   : > { %2443 = vmatmul.mubr.bf16.gmra.mrb[48].mxu1 %v541_v15  ;;  %2462 = vmatprep.mubr.msk.bf16.mxu0 %vm2667_vm0, %v2657_v16 }
  0x90   : > { %2463 = vmatmul.mubr.bf16.vlgmr.msra.gmra.mrb[52].mxu0 %v1062_v19 }
  0x91   : > { %2466 = vmatprep.mubr.msk.bf16.mxu0 %vm2667_vm0, %v2657_v16 }
  0x98   : > { %2467 = vmatmul.mubr.bf16.gmra.mrb[56].mxu0 %v1063_v22  ;;  %v2631_v22 = vld [vmem:[%s3308_s3 + $0x50] sm:$0xff]  }
  0x99   : > { %2470 = vmatprep.mubr.msk.bf16.mxu0 %vm2667_vm0, %v2657_v16  ;;  %2518 = vmatprep.subr.bf16.mxu1 %v2631_v22 }
  0x9a   : > { %2519 = vmatpush3.bf16.msra.mxu1 %v2631_v22 }
  0x9b   : > { %2520 = vmatprep.subr.bf16.mxu1 %v2632_v32 }
  0x9e   : > { %2521 = vmatpush3.bf16.msra.mxu1 %v2632_v32 }
  0xa0   : > { %2471 = vmatmul.mubr.bf16.gmra.mrb[60].mxu0 %v1064_v24 }
  0xa1   : > { %2474 = vmatprep.mubr.msk.bf16.mxu0 %vm2667_vm0, %v2657_v16 }
  0xa8   : > { %2475 = vmatmul.mubr.bf16.gmra.mrb[64].mxu0 %v1065_v26 }
  0xa9   : > { %2478 = vmatprep.mubr.msk.bf16.mxu0 %vm2667_vm0, %v2657_v16 }
  0xb0   : > { %2479 = vmatmul.mubr.bf16.gmra.mrb[68].mxu0 %v1066_v28 }
  0xb1   : > { %2482 = vmatprep.mubr.msk.bf16.mxu0 %vm2667_vm0, %v2657_v16 }
  0xb8   : > { %2483 = vmatmul.mubr.bf16.gmra.mrb[72].mxu0 %v1067_v31 }
  0xb9   : > { %2486 = vmatprep.mubr.msk.bf16.mxu0 %vm2667_vm0, %v2657_v16 }
  0xc0   : > { %2487 = vmatmul.mubr.bf16.gmra.mrb[76].mxu0 %v1068_v34 }
  0xc1   : > { %2490 = vmatprep.mubr.msk.bf16.mxu0 %vm2667_vm0, %v2657_v16 }
  0xc8   : > { %2491 = vmatmul.mubr.bf16.gmra.mrb[80].mxu0 %v1069_v37 }
  0xc9   : > { %2494 = vmatprep.mubr.msk.bf16.mxu0 %vm2667_vm0, %v2657_v16 }
  0xd0   : > { %2495 = vmatmul.mubr.bf16.gmra.mrb[84].mxu0 %v1070_v40 }
  0xd1   : > { %2498 = vmatprep.mubr.msk.bf16.mxu0 %vm2667_vm0, %v2657_v16 }
  0xd8   : > { %2499 = vmatmul.mubr.bf16.gmra.mrb[88].mxu0 %v1071_v43 }
  0xd9   : > { %2502 = vmatprep.mubr.msk.bf16.mxu0 %vm2667_vm0, %v2657_v16 }
  0xe0   : > { %2503 = vmatmul.mubr.bf16.gmra.mrb[92].mxu0 %v1072_v46 }
  0xe1   : > { %2506 = vmatprep.mubr.msk.bf16.mxu0 %vm2667_vm0, %v2657_v16 }
  0xe8   : > { %2507 = vmatmul.mubr.bf16.gmra.mrb[96].mxu0 %v1073_v49 }
  0xe9   : > { %2510 = vmatprep.mubr.msk.bf16.mxu0 %vm2667_vm0, %v2657_v16 }
  0xf0   : > { %2511 = vmatmul.mubr.bf16.gmra.mrb[100].mxu0 %v1074_v53  ;;  %v2633_v53 = vld [vmem:[%s3308_s3 + $0x60] sm:$0xff]  }
  0xf1   : > { %2522 = vmatprep.subr.bf16.mxu1 %v2633_v53 }
  0xf2   : > { %2523 = vmatpush3.bf16.msra.mxu1 %v2633_v53 }
  0xfb   : > { %v722_v54 = vpop.f32.mrb[0].mxu0 }
  0xfc   : > { %v907_v55 = vpop.f32.mrb[0].mxu1  ;;  %v2328_v56 = vpop.f32.mrb[1].mxu0 }
  0xfd   : > { %v3059_v57 = vadd.f32 %v907_v55, %v722_v54  ;;  %v2396_v58 = vpop.f32.mrb[1].mxu1  ;;  %v725_v59 = vpop.f32.mrb[2].mxu0 }
  0xfe   : > { %v910_v60 = vpop.f32.mrb[2].mxu1  ;;  %v2329_v61 = vpop.f32.mrb[3].mxu0 }
  0xff   : > { %v3064_v63 = vadd.f32 %v910_v60, %v725_v59  ;;  %v2397_v0 = vpop.f32.mrb[3].mxu1 }
 0x103   : > { %v730_v1 = vpop.f32.mrb[4].mxu0 }
 0x104   : > { %v915_v3 = vpop.f32.mrb[4].mxu1  ;;  %v2332_v4 = vpop.f32.mrb[5].mxu0 }
 0x105   : > { %v3066_v5 = vadd.f32 %v915_v3, %v730_v1  ;;  %v2400_v6 = vpop.f32.mrb[5].mxu1  ;;  %v733_v7 = vpop.f32.mrb[6].mxu0  ;;  %v2634_v3 = vld [vmem:[%s3308_s3 + $0x68] sm:$0xff]  }
 0x106   : > { %v918_v8 = vpop.f32.mrb[6].mxu1  ;;  %v2333_v9 = vpop.f32.mrb[7].mxu0  ;;  %2524 = vmatprep.subr.bf16.mxu1 %v2634_v3  ;;  %v2635_v6 = vld [vmem:[%s3308_s3 + $0x70] sm:$0xff]  }
 0x107   : > { %v3068_v10 = vadd.f32 %v918_v8, %v733_v7  ;;  %v2401_v11 = vpop.f32.mrb[7].mxu1  ;;  %2525 = vmatpush3.bf16.msra.mxu1 %v2634_v3 }
 0x108   : > { %2526 = vmatprep.subr.bf16.mxu1 %v2635_v6 }
 0x10b   : > { %v738_v12 = vpop.f32.mrb[8].mxu0  ;;  %2527 = vmatpush3.bf16.msra.mxu1 %v2635_v6 }
 0x10c   : > { %v923_v15 = vpop.f32.mrb[8].mxu1  ;;  %v2336_v16 = vpop.f32.mrb[9].mxu0 }
 0x10d   : > { %v3070_v17 = vadd.f32 %v923_v15, %v738_v12  ;;  %v2404_v18 = vpop.f32.mrb[9].mxu1  ;;  %v741_v19 = vpop.f32.mrb[10].mxu0 }
 0x10e   : > { %v926_v20 = vpop.f32.mrb[10].mxu1  ;;  %v2337_v21 = vpop.f32.mrb[11].mxu0 }
 0x10f   : > { %v3075_v2 = vadd.f32 %v926_v20, %v741_v19  ;;  %v2405_v23 = vpop.f32.mrb[11].mxu1  ;;  %v2636_v20 = vld [vmem:[%s3308_s3 + $0x78] sm:$0xff]  }
 0x110   : > { %2528 = vmatprep.subr.bf16.mxu1 %v2636_v20 }
 0x111   : > { %2529 = vmatpush3.bf16.msra.mxu1 %v2636_v20 }
 0x113   : > { %v746_v24 = vpop.f32.mrb[12].mxu0 }
 0x114   : > { %v931_v25 = vpop.f32.mrb[12].mxu1  ;;  %v2340_v13 = vpop.f32.mrb[13].mxu0 }
 0x115   : > { %v3077_v26 = vadd.f32 %v931_v25, %v746_v24  ;;  %v2408_v27 = vpop.f32.mrb[13].mxu1  ;;  %v749_v14 = vpop.f32.mrb[14].mxu0 }
 0x116   : > { %v934_v28 = vpop.f32.mrb[14].mxu1  ;;  %v2341_v29 = vpop.f32.mrb[15].mxu0 }
 0x117   : > { %v3079_v30 = vadd.f32 %v934_v28, %v749_v14  ;;  %v2409_v31 = vpop.f32.mrb[15].mxu1 }
 0x11b   : > { %v754_v33 = vpop.f32.mrb[16].mxu0 }
 0x11c   : > { %v939_v34 = vpop.f32.mrb[16].mxu1  ;;  %v2344_v35 = vpop.f32.mrb[17].mxu0 }
 0x11d   : > { %v3084_v36 = vadd.f32 %v939_v34, %v754_v33  ;;  %v2412_v37 = vpop.f32.mrb[17].mxu1  ;;  %v757_v38 = vpop.f32.mrb[18].mxu0 }
 0x11e   : > { %v942_v39 = vpop.f32.mrb[18].mxu1  ;;  %v2345_v40 = vpop.f32.mrb[19].mxu0 }
 0x11f   : > { %v3086_v41 = vadd.f32 %v942_v39, %v757_v38  ;;  %v2413_v42 = vpop.f32.mrb[19].mxu1 }
 0x123   : > { %v762_v43 = vpop.f32.mrb[20].mxu0 }
 0x124   : > { %v947_v44 = vpop.f32.mrb[20].mxu1  ;;  %v2348_v45 = vpop.f32.mrb[21].mxu0 }
 0x125   : > { %v3088_v46 = vadd.f32 %v947_v44, %v762_v43  ;;  %v2416_v47 = vpop.f32.mrb[21].mxu1  ;;  %v765_v48 = vpop.f32.mrb[22].mxu0  ;;  %v3123_v43 = vld [vmem:[%s3308_s3] sm:$0xff]  }
 0x126   : > { %v950_v49 = vpop.f32.mrb[22].mxu1  ;;  %v2349_v50 = vpop.f32.mrb[23].mxu0  ;;  %2538 = vmatprep.subr.bf16.mxu1 %v3123_v43 }
 0x127   : > { %v3090_v51 = vadd.f32 %v950_v49, %v765_v48  ;;  %v2417_v52 = vpop.f32.mrb[23].mxu1 }
 0x12b   : > { %v770_v54 = vpop.f32.mrb[24].mxu0 }
 0x12c   : > { %v955_v55 = vpop.f32.mrb[24].mxu1  ;;  %v2352_v56 = vpop.f32.mrb[25].mxu0 }
 0x12d   : > { %v3095_v58 = vadd.f32 %v955_v55, %v770_v54  ;;  %v2420_v59 = vpop.f32.mrb[25].mxu1  ;;  %v773_v60 = vpop.f32.mrb[26].mxu0 }
 0x12e   : > { %v958_v61 = vpop.f32.mrb[26].mxu1  ;;  %v2353_v62 = vpop.f32.mrb[27].mxu0 }
 0x12f   : > { %v3097_v0 = vadd.f32 %v958_v61, %v773_v60  ;;  %v2421_v1 = vpop.f32.mrb[27].mxu1 }
 0x133   : > { %v778_v4 = vpop.f32.mrb[28].mxu0 }
 0x134   : > { %v963_v7 = vpop.f32.mrb[28].mxu1  ;;  %v2356_v8 = vpop.f32.mrb[29].mxu0 }
 0x135   : > { %v3105_v9 = vadd.f32 %v963_v7, %v778_v4  ;;  %v2424_v11 = vpop.f32.mrb[29].mxu1  ;;  %v781_v12 = vpop.f32.mrb[30].mxu0 }
 0x136   : > { %v966_v15 = vpop.f32.mrb[30].mxu1  ;;  %v2357_v16 = vpop.f32.mrb[31].mxu0 }
 0x137   : > { %v3107_v18 = vadd.f32 %v966_v15, %v781_v12  ;;  %v2425_v19 = vpop.f32.mrb[31].mxu1 }
 0x13b   : > { %v786_v21 = vpop.f32.mrb[32].mxu0 }
 0x13c   : > { %v971_v22 = vpop.f32.mrb[32].mxu1  ;;  %v2360_v23 = vpop.f32.mrb[33].mxu0 }
 0x13d   : > { %v3112_v24 = vadd.f32 %v971_v22, %v786_v21  ;;  %v2428_v25 = vpop.f32.mrb[33].mxu1  ;;  %v789_v13 = vpop.f32.mrb[34].mxu0 }
 0x13e   : > { %v974_v27 = vpop.f32.mrb[34].mxu1  ;;  %v2361_v14 = vpop.f32.mrb[35].mxu0  ;;  %v3141_v25 = vld [vmem:[%s3306_s1 + $0x2] ss:$0 sm:$0xff] }
 0x13f   : > { %v3114_v28 = vadd.f32 %v974_v27, %v789_v13  ;;  %v2429_v29 = vpop.f32.mrb[35].mxu1 }
 0x143   : > { %v794_v31 = vpop.f32.mrb[36].mxu0 }
 0x144   : > { %v979_v32 = vpop.f32.mrb[36].mxu1  ;;  %v2364_v33 = vpop.f32.mrb[37].mxu0 }
 0x145   : > { %v3116_v34 = vadd.f32 %v979_v32, %v794_v31  ;;  %v2432_v35 = vpop.f32.mrb[37].mxu1  ;;  %v797_v37 = vpop.f32.mrb[38].mxu0 }
 0x146   : > { %v982_v38 = vpop.f32.mrb[38].mxu1  ;;  %v2365_v39 = vpop.f32.mrb[39].mxu0 }
 0x147   : > { %v3118_v40 = vadd.f32 %v982_v38, %v797_v37  ;;  %v2433_v42 = vpop.f32.mrb[39].mxu1 }
 0x14b   : > { %v802_v44 = vpop.f32.mrb[40].mxu0 }
 0x14c   : > { %v987_v45 = vpop.f32.mrb[40].mxu1  ;;  %v2368_v47 = vpop.f32.mrb[41].mxu0 }
 0x14d   : > { %v3126_v48 = vadd.f32 %v987_v45, %v802_v44  ;;  %v2436_v49 = vpop.f32.mrb[41].mxu1  ;;  %v805_v50 = vpop.f32.mrb[42].mxu0 }
 0x14e   : > { %v990_v52 = vpop.f32.mrb[42].mxu1  ;;  %v2369_v53 = vpop.f32.mrb[43].mxu0 }
 0x14f   : > { %v3128_v54 = vadd.f32 %v990_v52, %v805_v50  ;;  %v2437_v55 = vpop.f32.mrb[43].mxu1  ;;  %v3154_v52 = vld [vmem:[%s3306_s1 + $0x3] ss:$0 sm:$0xff] }
 0x153   : > { %v810_v56 = vpop.f32.mrb[44].mxu0 }
 0x154   : > { %v995_v59 = vpop.f32.mrb[44].mxu1  ;;  %v2372_v60 = vpop.f32.mrb[45].mxu0 }
 0x155   : > { %v3130_v61 = vadd.f32 %v995_v59, %v810_v56  ;;  %v2440_v62 = vpop.f32.mrb[45].mxu1  ;;  %v813_v1 = vpop.f32.mrb[46].mxu0 }
 0x156   : > { %v998_v3 = vpop.f32.mrb[46].mxu1  ;;  %v2373_v4 = vpop.f32.mrb[47].mxu0 }
 0x157   : > { %v3132_v6 = vadd.f32 %v998_v3, %v813_v1  ;;  %v2441_v7 = vpop.f32.mrb[47].mxu1  ;;  %v3160_v1 = vld [vmem:[%s3306_s1 + $0x4] ss:$0 sm:$0xff] }
 0x15b   : > { %v818_v8 = vpop.f32.mrb[48].mxu0 }
 0x15c   : > { %v1003_v11 = vpop.f32.mrb[48].mxu1  ;;  %v2376_v12 = vpop.f32.mrb[49].mxu0 }
 0x15d   : > { %v3134_v15 = vadd.f32 %v1003_v11, %v818_v8  ;;  %v2444_v16 = vpop.f32.mrb[49].mxu1  ;;  %v821_v19 = vpop.f32.mrb[50].mxu0 }
 0x15e   : > { %v1006_v20 = vpop.f32.mrb[50].mxu1  ;;  %v2377_v21 = vpop.f32.mrb[51].mxu0 }
 0x15f   : > { %v3136_v22 = vadd.f32 %v1006_v20, %v821_v19  ;;  %v2445_v23 = vpop.f32.mrb[51].mxu1 }
 0x163   : > { %v1174_v13 = vpop.f32.mrb[52].mxu0 }
 0x164   : > { %v1277_v27 = vadd.f32 %v1174_v13, %v3059_v57  ;;  %v2464_v14 = vpop.f32.mrb[53].mxu0 }
 0x165   : > { %v1177_v29 = vpop.f32.mrb[54].mxu0 }
 0x166   : > { %v1307_v31 = vadd.f32 %v3141_v25, %v1277_v27  ;;  %v1278_v32 = vadd.f32 %v1177_v29, %v3064_v63  ;;  %v2465_v33 = vpop.f32.mrb[55].mxu0 }
 0x168   : > { %v1333_v35 = vmax.f32 %v1307_v31, 0.0  ;;  %v1308_v37 = vadd.f32 %v3141_v25, %v1278_v32 }
 0x16a   : > { %1359 = vst [vmem:[#allocation3] sm:$0xff] %v1333_v35  ;;  %v1334_v38 = vmax.f32 %v1308_v37, 0.0 }
 0x16b   : > { %v1182_v39 = vpop.f32.mrb[56].mxu0 }
 0x16c   : > { %1360 = vst [vmem:[#allocation3 + $0x8] sm:$0xff] %v1334_v38  ;;  %v1279_v42 = vadd.f32 %v1182_v39, %v3066_v5  ;;  %v2468_v44 = vpop.f32.mrb[57].mxu0 }
 0x16d   : > { %v1185_v45 = vpop.f32.mrb[58].mxu0 }
 0x16e   : > { %v1309_v57 = vadd.f32 %v3141_v25, %v1279_v42  ;;  %v1280_v47 = vadd.f32 %v1185_v45, %v3068_v10  ;;  %v2469_v49 = vpop.f32.mrb[59].mxu0 }
 0x170   : > { %v1335_v50 = vmax.f32 %v1309_v57, 0.0  ;;  %v1310_v63 = vadd.f32 %v3141_v25, %v1280_v47 }
 0x172   : > { %1361 = vst [vmem:[#allocation3 + $0x10] sm:$0xff] %v1335_v50  ;;  %v1336_v53 = vmax.f32 %v1310_v63, 0.0 }
 0x173   : > { %v1385_v55 = vld [vmem:[#allocation3] ss:$2 sm:$0xff]  ;;  %v1411_v56 = vld [vmem:[#allocation3 + $0x1] ss:$2 sm:$0xff]  ;;  %v1190_v5 = vpop.f32.mrb[60].mxu0 }
 0x174   : > { %v1436_v59 = vmax.f32 %v1385_v55, %v1411_v56  ;;  %1362 = vst [vmem:[#allocation3 + $0x18] sm:$0xff] %v1336_v53  ;;  %v1281_v60 = vadd.f32 %v1190_v5, %v3070_v17  ;;  %v2472_v62 = vpop.f32.mrb[61].mxu0 }
 0x175   : > { %v1193_v10 = vpop.f32.mrb[62].mxu0 }
 0x176   : > { %v1457_v3 = vmul.f32 %v3154_v52, %v1436_v59  ;;  %v1311_v4 = vadd.f32 %v3141_v25, %v1281_v60  ;;  %v1282_v7 = vadd.f32 %v1193_v10, %v3075_v2  ;;  %v2473_v8 = vpop.f32.mrb[63].mxu0 }
 0x178   : > { %v1337_v11 = vmax.f32 %v1311_v4, 0.0  ;;  %v1312_v12 = vadd.f32 %v3141_v25, %v1282_v7  ;;  %v1474_v16 = vadd.f32 %v3160_v1, %v1457_v3 }
 0x17a   : > { %1363 = vst [vmem:[#allocation3 + $0x20] sm:$0xff] %v1337_v11  ;;  %v1338_v17 = vmax.f32 %v1312_v12, 0.0  ;;  %1487 = vst [vmem:[#allocation4 + $0x1] sm:$0xff] %v1474_v16 }
 0x17b   : > { %v1387_v19 = vld [vmem:[#allocation3 + $0x10] ss:$2 sm:$0xff]  ;;  %v1413_v20 = vld [vmem:[#allocation3 + $0x11] ss:$2 sm:$0xff]  ;;  %v1198_v21 = vpop.f32.mrb[64].mxu0 }
 0x17c   : > { %v1437_v23 = vmax.f32 %v1387_v19, %v1413_v20  ;;  %1364 = vst [vmem:[#allocation3 + $0x28] sm:$0xff] %v1338_v17  ;;  %v1283_v13 = vadd.f32 %v1198_v21, %v3077_v26  ;;  %v2476_v27 = vpop.f32.mrb[65].mxu0 }
 0x17d   : > { %v1201_v14 = vpop.f32.mrb[66].mxu0 }
 0x17e   : > { %v1458_v2 = vmul.f32 %v3154_v52, %v1437_v23  ;;  %v1313_v29 = vadd.f32 %v3141_v25, %v1283_v13  ;;  %v1284_v31 = vadd.f32 %v1201_v14, %v3079_v30  ;;  %v2477_v32 = vpop.f32.mrb[67].mxu0 }
 0x180   : > { %v1339_v33 = vmax.f32 %v1313_v29, 0.0  ;;  %v1314_v35 = vadd.f32 %v3141_v25, %v1284_v31  ;;  %v1475_v37 = vadd.f32 %v3160_v1, %v1458_v2 }
 0x182   : > { %1365 = vst [vmem:[#allocation3 + $0x30] sm:$0xff] %v1339_v33  ;;  %v1340_v38 = vmax.f32 %v1314_v35, 0.0  ;;  %1488 = vst [vmem:[#allocation4 + $0x9] sm:$0xff] %v1475_v37 }
 0x183   : > { %v1389_v39 = vld [vmem:[#allocation3 + $0x20] ss:$2 sm:$0xff]  ;;  %v1415_v42 = vld [vmem:[#allocation3 + $0x21] ss:$2 sm:$0xff]  ;;  %v1206_v26 = vpop.f32.mrb[68].mxu0 }
 0x184   : > { %v1438_v44 = vmax.f32 %v1389_v39, %v1415_v42  ;;  %1366 = vst [vmem:[#allocation3 + $0x38] sm:$0xff] %v1340_v38  ;;  %v1285_v45 = vadd.f32 %v1206_v26, %v3084_v36  ;;  %v2480_v57 = vpop.f32.mrb[69].mxu0 }
 0x185   : > { %v1209_v47 = vpop.f32.mrb[70].mxu0 }
 0x186   : > { %v1459_v30 = vmul.f32 %v3154_v52, %v1438_v44  ;;  %v1315_v49 = vadd.f32 %v3141_v25, %v1285_v45  ;;  %v1286_v50 = vadd.f32 %v1209_v47, %v3086_v41  ;;  %v2481_v63 = vpop.f32.mrb[71].mxu0 }
 0x188   : > { %v1341_v53 = vmax.f32 %v1315_v49, 0.0  ;;  %v1316_v55 = vadd.f32 %v3141_v25, %v1286_v50  ;;  %v1476_v56 = vadd.f32 %v3160_v1, %v1459_v30 }
 0x189   : > { %v1534_v37 = vld [vmem:[#allocation4 + $0x1] ss:$2 sm:$0xff] }
 0x18a   : > { %1367 = vst [vmem:[#allocation3 + $0x40] sm:$0xff] %v1341_v53  ;;  %v1342_v5 = vmax.f32 %v1316_v55, 0.0  ;;  %1489 = vst [vmem:[#allocation4 + $0x11] sm:$0xff] %v1476_v56 }
 0x18b   : > { %v1391_v59 = vld [vmem:[#allocation3 + $0x30] ss:$2 sm:$0xff]  ;;  %v1417_v60 = vld [vmem:[#allocation3 + $0x31] ss:$2 sm:$0xff]  ;;  %v1214_v36 = vpop.f32.mrb[72].mxu0 }
 0x18c   : > { %v1439_v62 = vmax.f32 %v1391_v59, %v1417_v60  ;;  %1368 = vst [vmem:[#allocation3 + $0x48] sm:$0xff] %v1342_v5  ;;  %v1287_v10 = vadd.f32 %v1214_v36, %v3088_v46  ;;  %v2484_v3 = vpop.f32.mrb[73].mxu0 }
 0x18d   : > { %v1217_v4 = vpop.f32.mrb[74].mxu0 }
 0x18e   : > { %v1460_v41 = vmul.f32 %v3154_v52, %v1439_v62  ;;  %v1317_v7 = vadd.f32 %v3141_v25, %v1287_v10  ;;  %v1288_v8 = vadd.f32 %v1217_v4, %v3090_v51  ;;  %v2485_v11 = vpop.f32.mrb[75].mxu0 }
 0x190   : > { %v1343_v12 = vmax.f32 %v1317_v7, 0.0  ;;  %v1318_v16 = vadd.f32 %v3141_v25, %v1288_v8  ;;  %v1477_v17 = vadd.f32 %v3160_v1, %v1460_v41 }
 0x192   : > { %1369 = vst [vmem:[#allocation3 + $0x50] sm:$0xff] %v1343_v12  ;;  %v1344_v19 = vmax.f32 %v1318_v16, 0.0  ;;  %1490 = vst [vmem:[#allocation4 + $0x19] sm:$0xff] %v1477_v17 }
 0x193   : > { %v1393_v20 = vld [vmem:[#allocation3 + $0x40] ss:$2 sm:$0xff]  ;;  %v1419_v21 = vld [vmem:[#allocation3 + $0x41] ss:$2 sm:$0xff]  ;;  %v1222_v46 = vpop.f32.mrb[76].mxu0 }
 0x194   : > { %v1440_v23 = vmax.f32 %v1393_v20, %v1419_v21  ;;  %1370 = vst [vmem:[#allocation3 + $0x58] sm:$0xff] %v1344_v19  ;;  %v1289_v13 = vadd.f32 %v1222_v46, %v3095_v58  ;;  %v2488_v27 = vpop.f32.mrb[77].mxu0 }
 0x195   : > { %v1225_v14 = vpop.f32.mrb[78].mxu0 }
 0x196   : > { %v1461_v51 = vmul.f32 %v3154_v52, %v1440_v23  ;;  %v1319_v2 = vadd.f32 %v3141_v25, %v1289_v13  ;;  %v1290_v29 = vadd.f32 %v1225_v14, %v3097_v0  ;;  %v2489_v31 = vpop.f32.mrb[79].mxu0 }
 0x198   : > { %v1478_v32 = vadd.f32 %v3160_v1, %v1461_v51  ;;  %v1345_v33 = vmax.f32 %v1319_v2, 0.0  ;;  %v1320_v35 = vadd.f32 %v3141_v25, %v1290_v29 }
 0x199   : > { %v1536_v38 = vld [vmem:[#allocation4 + $0x11] ss:$2 sm:$0xff] }
 0x19a   : > { %1491 = vst [vmem:[#allocation4 + $0x21] sm:$0xff] %v1478_v32  ;;  %1371 = vst [vmem:[#allocation3 + $0x60] sm:$0xff] %v1345_v33  ;;  %v1346_v39 = vmax.f32 %v1320_v35, 0.0  ;;  %v1547_v58 = vpack.c.bf16 %v1536_v38, %v1534_v37 }
 0x19b   : > { %v1395_v42 = vld [vmem:[#allocation3 + $0x50] ss:$2 sm:$0xff]  ;;  %v1421_v26 = vld [vmem:[#allocation3 + $0x51] ss:$2 sm:$0xff]  ;;  %v1230_v44 = vpop.f32.mrb[80].mxu0 }
 0x19c   : > { %v1441_v45 = vmax.f32 %v1395_v42, %v1421_v26  ;;  %1372 = vst [vmem:[#allocation3 + $0x68] sm:$0xff] %v1346_v39  ;;  %v1291_v57 = vadd.f32 %v1230_v44, %v3105_v9  ;;  %v2492_v0 = vpop.f32.mrb[81].mxu0  ;;  %2530 = vmatprep.mubr.bf16.mxu1 %v1547_v58 }
 0x19d   : > { %v1233_v47 = vpop.f32.mrb[82].mxu0 }
 0x19e   : > { %v1462_v30 = vmul.f32 %v3154_v52, %v1441_v45  ;;  %v1321_v49 = vadd.f32 %v3141_v25, %v1291_v57  ;;  %v1292_v50 = vadd.f32 %v1233_v47, %v3107_v18  ;;  %v2493_v63 = vpop.f32.mrb[83].mxu0 }
 0x1a0   : > { %v1479_v53 = vadd.f32 %v3160_v1, %v1462_v30  ;;  %v1347_v55 = vmax.f32 %v1321_v49, 0.0  ;;  %v1322_v56 = vadd.f32 %v3141_v25, %v1292_v50 }
 0x1a2   : > { %1492 = vst [vmem:[#allocation4 + $0x29] sm:$0xff] %v1479_v53  ;;  %1373 = vst [vmem:[#allocation3 + $0x70] sm:$0xff] %v1347_v55  ;;  %v1348_v5 = vmax.f32 %v1322_v56, 0.0 }
 0x1a3   : > { %v1397_v59 = vld [vmem:[#allocation3 + $0x60] ss:$2 sm:$0xff]  ;;  %v1423_v9 = vld [vmem:[#allocation3 + $0x61] ss:$2 sm:$0xff]  ;;  %v1238_v60 = vpop.f32.mrb[84].mxu0 }
 0x1a4   : > { %v1442_v36 = vmax.f32 %v1397_v59, %v1423_v9  ;;  %1374 = vst [vmem:[#allocation3 + $0x78] sm:$0xff] %v1348_v5  ;;  %v1293_v62 = vadd.f32 %v1238_v60, %v3112_v24  ;;  %v2496_v10 = vpop.f32.mrb[85].mxu0 }
 0x1a5   : > { %v1241_v3 = vpop.f32.mrb[86].mxu0 }
 0x1a6   : > { %v1463_v18 = vmul.f32 %v3154_v52, %v1442_v36  ;;  %v1323_v4 = vadd.f32 %v3141_v25, %v1293_v62  ;;  %v1294_v41 = vadd.f32 %v1241_v3, %v3114_v28  ;;  %v2497_v7 = vpop.f32.mrb[87].mxu0  ;;  %v2639_v62 = vld [vmem:[%s3308_s3 + $0x10] sm:$0xff]  }
 0x1a8   : > { %v1480_v8 = vadd.f32 %v3160_v1, %v1463_v18  ;;  %v1349_v11 = vmax.f32 %v1323_v4, 0.0  ;;  %v1324_v12 = vadd.f32 %v3141_v25, %v1294_v41  ;;  %v2640_v18 = vld [vmem:[%s3308_s3 + $0x18] sm:$0xff]  }
 0x1a9   : > { %v1538_v0 = vld [vmem:[#allocation4 + $0x21] ss:$2 sm:$0xff] }
 0x1aa   : > { %1493 = vst [vmem:[#allocation4 + $0x31] sm:$0xff] %v1480_v8  ;;  %1375 = vst [vmem:[#allocation3 + $0x80] sm:$0xff] %v1349_v11  ;;  %v1350_v16 = vmax.f32 %v1324_v12, 0.0 }
 0x1ab   : > { %v1399_v17 = vld [vmem:[#allocation3 + $0x70] ss:$2 sm:$0xff]  ;;  %v1425_v19 = vld [vmem:[#allocation3 + $0x71] ss:$2 sm:$0xff]  ;;  %v1246_v24 = vpop.f32.mrb[88].mxu0 }
 0x1ac   : > { %v1443_v20 = vmax.f32 %v1399_v17, %v1425_v19  ;;  %1376 = vst [vmem:[#allocation3 + $0x88] sm:$0xff] %v1350_v16  ;;  %v1295_v21 = vadd.f32 %v1246_v24, %v3116_v34  ;;  %v2500_v46 = vpop.f32.mrb[89].mxu0 }
 0x1ad   : > { %v1249_v23 = vpop.f32.mrb[90].mxu0 }
 0x1ae   : > { %v1464_v28 = vmul.f32 %v3154_v52, %v1443_v20  ;;  %v1325_v13 = vadd.f32 %v3141_v25, %v1295_v21  ;;  %v1296_v27 = vadd.f32 %v1249_v23, %v3118_v40  ;;  %v2501_v14 = vpop.f32.mrb[91].mxu0  ;;  %v2641_v20 = vld [vmem:[%s3308_s3 + $0x20] sm:$0xff]  }
 0x1b0   : > { %v1481_v51 = vadd.f32 %v3160_v1, %v1464_v28  ;;  %v1351_v2 = vmax.f32 %v1325_v13, 0.0  ;;  %v1326_v29 = vadd.f32 %v3141_v25, %v1296_v27 }
 0x1b2   : > { %1494 = vst [vmem:[#allocation4 + $0x39] sm:$0xff] %v1481_v51  ;;  %1377 = vst [vmem:[#allocation3 + $0x90] sm:$0xff] %v1351_v2  ;;  %v1352_v31 = vmax.f32 %v1326_v29, 0.0  ;;  %v2644_v2 = vld [vmem:[%s3308_s3 + $0x38] sm:$0xff]  }
 0x1b3   : > { %v1401_v32 = vld [vmem:[#allocation3 + $0x80] ss:$2 sm:$0xff]  ;;  %v1427_v33 = vld [vmem:[#allocation3 + $0x81] ss:$2 sm:$0xff]  ;;  %v1254_v34 = vpop.f32.mrb[92].mxu0 }
 0x1b4   : > { %v1444_v35 = vmax.f32 %v1401_v32, %v1427_v33  ;;  %1378 = vst [vmem:[#allocation3 + $0x98] sm:$0xff] %v1352_v31  ;;  %v1297_v37 = vadd.f32 %v1254_v34, %v3126_v48  ;;  %v2504_v38 = vpop.f32.mrb[93].mxu0  ;;  %v2638_v48 = vld [vmem:[%s3308_s3 + $0x8] sm:$0xff]   ;;  %v2645_v34 = vld [vmem:[%s3308_s3 + $0x80] sm:$0xff]  }
 0x1b5   : > { %v1257_v39 = vpop.f32.mrb[94].mxu0 }
 0x1b6   : > { %v1465_v40 = vmul.f32 %v3154_v52, %v1444_v35  ;;  %v1327_v58 = vadd.f32 %v3141_v25, %v1297_v37  ;;  %v1298_v42 = vadd.f32 %v1257_v39, %v3128_v54  ;;  %v2505_v26 = vpop.f32.mrb[95].mxu0 }
 0x1b7   : > { %v1500_v26 = vld [vmem:[#allocation4] ss:$2 sm:$0xff] }
 0x1b8   : > { %v1353_v44 = vmax.f32 %v1327_v58, 0.0  ;;  %v1328_v45 = vadd.f32 %v3141_v25, %v1298_v42  ;;  %v1482_v57 = vadd.f32 %v3160_v1, %v1465_v40  ;;  %v1502_v40 = vld [vmem:[#allocation4 + $0x10] ss:$2 sm:$0xff] }
 0x1b9   : > { %v1540_v47 = vld [vmem:[#allocation4 + $0x31] ss:$2 sm:$0xff] }
 0x1ba   : > { %1379 = vst [vmem:[#allocation3 + $0xa0] sm:$0xff] %v1353_v44  ;;  %v1354_v30 = vmax.f32 %v1328_v45, 0.0  ;;  %v1548_v49 = vpack.c.bf16 %v1540_v47, %v1538_v0  ;;  %1495 = vst [vmem:[#allocation4 + $0x41] sm:$0xff] %v1482_v57  ;;  %v1513_v44 = vpack.c.bf16 %v1502_v40, %v1500_v26  ;;  %v1504_v57 = vld [vmem:[#allocation4 + $0x20] ss:$2 sm:$0xff] }
 0x1bb   : > { %v1403_v50 = vld [vmem:[#allocation3 + $0x90] ss:$2 sm:$0xff]  ;;  %v1429_v63 = vld [vmem:[#allocation3 + $0x91] ss:$2 sm:$0xff]  ;;  %v1262_v53 = vpop.f32.mrb[96].mxu0 }
 0x1bc   : > { %v1445_v54 = vmax.f32 %v1403_v50, %v1429_v63  ;;  %1380 = vst [vmem:[#allocation3 + $0xa8] sm:$0xff] %v1354_v30  ;;  %v1299_v55 = vadd.f32 %v1262_v53, %v3130_v61  ;;  %v2508_v56 = vpop.f32.mrb[97].mxu0  ;;  %2531 = vmatmul.mubr.bf16.vlgmr.msra.gmra.mrb[52].mxu1 %v1548_v49  ;;  %v2647_v49 = vld [vmem:[%s3308_s3 + $0x90] sm:$0xff]   ;;  %v1793_v53 = vld [vmem:[#allocation4 + $0x2] ss:$2 sm:$0xff] }
 0x1bd   : > { %v1265_v5 = vpop.f32.mrb[98].mxu0  ;;  %2539 = vmatpush3.bf16.msra.mxu1 %v3123_v43  ;;  %v1795_v50 = vld [vmem:[#allocation4 + $0x12] ss:$2 sm:$0xff]  ;;  %v2649_v56 = vld [vmem:[%s3308_s3 + $0xa0] sm:$0xff]  }
 0x1be   : > { %v1466_v59 = vmul.f32 %v3154_v52, %v1445_v54  ;;  %v1329_v9 = vadd.f32 %v3141_v25, %v1299_v55  ;;  %v1300_v60 = vadd.f32 %v1265_v5, %v3132_v6  ;;  %v2509_v36 = vpop.f32.mrb[99].mxu0  ;;  %2540 = vmatprep.subr.bf16.mxu1 %v2638_v48  ;;  %v2648_v54 = vld [vmem:[%s3308_s3 + $0x98] sm:$0xff]   ;;  %v1806_v55 = vpack.c.bf16 %v1795_v50, %v1793_v53  ;;  %v2650_v5 = vld [vmem:[%s3308_s3 + $0xa8] sm:$0xff]  }
 0x1c0   : > { %v1355_v10 = vmax.f32 %v1329_v9, 0.0  ;;  %v1330_v61 = vadd.f32 %v3141_v25, %v1300_v60  ;;  %v1483_v3 = vadd.f32 %v3160_v1, %v1466_v59  ;;  %v2651_v59 = vld [vmem:[%s3308_s3 + $0xb0] sm:$0xff]   ;;  %v2652_v9 = vld [vmem:[%s3308_s3 + $0xb8] sm:$0xff]  }
 0x1c1   : > { %2541 = vmatpush3.bf16.msra.mxu1 %v2638_v48  ;;  %v1799_v60 = vld [vmem:[#allocation4 + $0x32] ss:$2 sm:$0xff] }
 0x1c2   : > { %1381 = vst [vmem:[#allocation3 + $0xb0] sm:$0xff] %v1355_v10  ;;  %v1356_v43 = vmax.f32 %v1330_v61, 0.0  ;;  %2542 = vmatprep.subr.bf16.mxu1 %v2639_v62  ;;  %1496 = vst [vmem:[#allocation4 + $0x49] sm:$0xff] %v1483_v3 }
 0x1c3   : > { %v1405_v6 = vld [vmem:[#allocation3 + $0xa0] ss:$2 sm:$0xff]  ;;  %v1431_v4 = vld [vmem:[#allocation3 + $0xa1] ss:$2 sm:$0xff]  ;;  %v1270_v41 = vpop.f32.mrb[100].mxu0 }
 0x1c4   : > { %v1446_v7 = vmax.f32 %v1405_v6, %v1431_v4  ;;  %1382 = vst [vmem:[#allocation3 + $0xb8] sm:$0xff] %v1356_v43  ;;  %v1301_v8 = vadd.f32 %v1270_v41, %v3134_v15  ;;  %v2512_v11 = vpop.f32.mrb[101].mxu0 }
 0x1c5   : > { %v1273_v12 = vpop.f32.mrb[102].mxu0  ;;  %2543 = vmatpush3.bf16.msra.mxu1 %v2639_v62  ;;  %v1797_v62 = vld [vmem:[#allocation4 + $0x22] ss:$2 sm:$0xff] }
 0x1c6   : > { %v1467_v16 = vmul.f32 %v3154_v52, %v1446_v7  ;;  %v1331_v17 = vadd.f32 %v3141_v25, %v1301_v8  ;;  %v1302_v19 = vadd.f32 %v1273_v12, %v3136_v22  ;;  %v2513_v24 = vpop.f32.mrb[103].mxu0  ;;  %2544 = vmatprep.subr.bf16.mxu1 %v2640_v18  ;;  %v2642_v22 = vld [vmem:[%s3308_s3 + $0x28] sm:$0xff]   ;;  %v1807_v10 = vpack.c.bf16 %v1799_v60, %v1797_v62  ;;  %v2006_v60 = vld [vmem:[%s3309_s4] sm:$0xff] }
 0x1c8   : > { %v1357_v21 = vmax.f32 %v1331_v17, 0.0  ;;  %v1332_v46 = vadd.f32 %v3141_v25, %v1302_v19  ;;  %v1484_v15 = vadd.f32 %v3160_v1, %v1467_v16  ;;  %v2643_v25 = vld [vmem:[%s3308_s3 + $0x30] sm:$0xff]  }
 0x1c9   : > { %2545 = vmatpush3.bf16.msra.mxu1 %v2640_v18  ;;  %v1542_v37 = vld [vmem:[#allocation4 + $0x41] ss:$2 sm:$0xff]  ;;  %v1508_v47 = vld [vmem:[#allocation4 + $0x40] ss:$2 sm:$0xff] }
 0x1ca   : > { %1383 = vst [vmem:[#allocation3 + $0xc0] sm:$0xff] %v1357_v21  ;;  %v1358_v23 = vmax.f32 %v1332_v46, 0.0  ;;  %2546 = vmatprep.subr.bf16.mxu1 %v2641_v20  ;;  %1497 = vst [vmem:[#allocation4 + $0x51] sm:$0xff] %v1484_v15  ;;  %v1801_v61 = vld [vmem:[#allocation4 + $0x42] ss:$2 sm:$0xff] }
 0x1cb   : > { %v1407_v28 = vld [vmem:[#allocation3 + $0xb0] ss:$2 sm:$0xff]  ;;  %v1433_v13 = vld [vmem:[#allocation3 + $0xb1] ss:$2 sm:$0xff] }
 0x1cc   : > { %v1447_v27 = vmax.f32 %v1407_v28, %v1433_v13  ;;  %1384 = vst [vmem:[#allocation3 + $0xc8] sm:$0xff] %v1358_v23 }
 0x1cd   : > { %2547 = vmatpush3.bf16.msra.mxu1 %v2641_v20  ;;  %v2206_v20 = vld [vmem:[%s3306_s1 + $0x5] ss:$0 sm:$0xff] }
 0x1ce   : > { %v1468_v14 = vmul.f32 %v3154_v52, %v1447_v27  ;;  %2548 = vmatprep.subr.bf16.mxu1 %v2642_v22 }
 0x1d0   : > { %v1485_v51 = vadd.f32 %v3160_v1, %v1468_v14 }
 0x1d1   : > { %2549 = vmatpush3.bf16.msra.mxu1 %v2642_v22 }
 0x1d2   : > { %1498 = vst [vmem:[#allocation4 + $0x59] sm:$0xff] %v1485_v51  ;;  %2550 = vmatprep.subr.bf16.mxu1 %v2643_v25 }
 0x1d3   : > { %v1409_v29 = vld [vmem:[#allocation3 + $0xc0] ss:$2 sm:$0x7f]  ;;  %v1435_v31 = vld [vmem:[#allocation3 + $0xc1] ss:$2 sm:$0x7f] }
 0x1d4   : > { %v1448_v32 = vmax.f32 %v1409_v29, %v1435_v31 }
 0x1d5   : > { %2551 = vmatpush3.bf16.msra.mxu1 %v2643_v25 }
 0x1d6   : > { %v1469_v33 = vmul.f32 %v3154_v52, %v1448_v32  ;;  %2552 = vmatprep.subr.bf16.mxu1 %v2644_v2  ;;  %v1506_v52 = vld [vmem:[#allocation4 + $0x30] ss:$2 sm:$0xff] }
 0x1d7   : > { %v1514_v0 = vpack.c.bf16 %v1506_v52, %v1504_v57 }
 0x1d8   : > { %v1486_v35 = vadd.f32 %v3160_v1, %v1469_v33  ;;  %v2646_v1 = vld [vmem:[%s3308_s3 + $0x88] sm:$0xff]  }
 0x1d9   : > { %v1544_v38 = vld [vmem:[#allocation4 + $0x51] ss:$2 sm:$0xff]  ;;  %2553 = vmatpush3.bf16.msra.mxu1 %v2644_v2  ;;  %v1510_v45 = vld [vmem:[#allocation4 + $0x50] ss:$2 sm:$0xff] }
 0x1da   : > { %v1549_v39 = vpack.c.bf16 %v1544_v38, %v1542_v37  ;;  %1499 = vst [vmem:[#allocation4 + $0x61] sm:$0x7f] %v1486_v35  ;;  %2562 = vmatprep.subr.bf16.mxu1 %v2645_v34  ;;  %v1515_v30 = vpack.c.bf16 %v1510_v45, %v1508_v47  ;;  %v1803_v36 = vld [vmem:[#allocation4 + $0x52] ss:$2 sm:$0xff] }
 0x1db   : > { %v1808_v3 = vpack.c.bf16 %v1803_v36, %v1801_v61  ;;  %v2009_v61 = vld [vmem:[%s3309_s4 + $0x18] sm:$0x3] }
 0x1dc   : > { %2534 = vmatprep.mubr.bf16.mxu1 %v1549_v39 }
 0x1e1   : > { %v1546_v58 = vld [vmem:[#allocation4 + $0x61] ss:$2 sm:$0xff]  ;;  %v1512_v48 = vld [vmem:[#allocation4 + $0x60] ss:$2 sm:$0xff] }
 0x1e2   : > { %v1550_v42 = vpack.c.bf16 %v1546_v58, %v1546_v58  ;;  %v1516_v63 = vpack.c.bf16 %v1512_v48, %v1512_v48  ;;  %v1805_v43 = vld [vmem:[#allocation4 + $0x62] ss:$2 sm:$0xff]  ;;  %v2208_v48 = vld [vmem:[%s3306_s1 + $0x7] ss:$0 sm:$0xff] }
 0x1e3   : > { %v1809_v18 = vpack.c.bf16 %v1805_v43, %v1805_v43 }
 0x1e4   : > { %2535 = vmatmul.mubr.bf16.gmra.mrb[56].mxu1 %v1550_v42 }
 0x1e5   : > { %2554 = vmatprep.mubr.bf16.mxu1 %v1513_v44 }
 0x1ec   : > { %2555 = vmatmul.mubr.bf16.vlgmr.msra.gmra.mrb[52].mxu1 %v1514_v0 }
 0x1ed   : > { %2563 = vmatpush3.bf16.msra.mxu1 %v2645_v34  ;;  %2558 = vmatprep.mubr.bf16.mxu1 %v1515_v30 }
 0x1ee   : > { %2564 = vmatprep.subr.bf16.mxu1 %v2646_v1 }
 0x1f1   : > { %2565 = vmatpush3.bf16.msra.mxu1 %v2646_v1  ;;  %v2207_v1 = vld [vmem:[%s3306_s1 + $0x6] ss:$0 sm:$0xff] }
 0x1f2   : > { %2566 = vmatprep.subr.bf16.mxu1 %v2647_v49 }
 0x1f4   : > { %2559 = vmatmul.mubr.bf16.gmra.mrb[60].mxu1 %v1516_v63 }
 0x1f5   : > { %2567 = vmatpush3.bf16.msra.mxu1 %v2647_v49  ;;  %2578 = vmatprep.mubr.bf16.mxu1 %v1806_v55 }
 0x1f6   : > { %2568 = vmatprep.subr.bf16.mxu1 %v2648_v54 }
 0x1f9   : > { %2569 = vmatpush3.bf16.msra.mxu1 %v2648_v54 }
 0x1fa   : > { %2570 = vmatprep.subr.bf16.mxu1 %v2649_v56 }
 0x1fd   : > { %2571 = vmatpush3.bf16.msra.mxu1 %v2649_v56  ;;  %v2007_v56 = vld [vmem:[%s3309_s4 + $0x8] sm:$0xff] }
 0x1fe   : > { %2572 = vmatprep.subr.bf16.mxu1 %v2650_v5 }
 0x201   : > { %2573 = vmatpush3.bf16.msra.mxu1 %v2650_v5 }
 0x202   : > { %2574 = vmatprep.subr.bf16.mxu1 %v2651_v59 }
 0x205   : > { %2575 = vmatpush3.bf16.msra.mxu1 %v2651_v59 }
 0x206   : > { %2576 = vmatprep.subr.bf16.mxu1 %v2652_v9 }
 0x209   : > { %2577 = vmatpush3.bf16.msra.mxu1 %v2652_v9 }
 0x20c   : > { %2579 = vmatmul.mubr.bf16.vlgmr.msra.gmra.mrb[52].mxu1 %v1807_v10 }
 0x20d   : > { %2582 = vmatprep.mubr.bf16.mxu1 %v1808_v3 }
 0x214   : > { %2583 = vmatmul.mubr.bf16.gmra.mrb[64].mxu1 %v1809_v18  ;;  %v2008_v18 = vld [vmem:[%s3309_s4 + $0x10] sm:$0xff] }
 0x2b7   : > { %v2536_v6 = vpop.f32.mrb[56].mxu1 }
 0x2b8   : > { %v1666_v4 = vpop.f32.mrb[57].mxu1 }
 0x2b9   : > { %v2537_v41 = vpop.f32.mrb[58].mxu1 }
 0x2ba   : > { %v1669_v7 = vpop.f32.mrb[59].mxu1 }
 0x2c7   : > { %v2560_v8 = vpop.f32.mrb[60].mxu1 }
 0x2c8   : > { %v1787_v11 = vadd.f32 %v2560_v8, %v2536_v6  ;;  %v1778_v12 = vpop.f32.mrb[61].mxu1 }
 0x2c9   : > { %v1779_v16 = vadd.f32 %v1778_v12, %v1666_v4  ;;  %v2561_v17 = vpop.f32.mrb[62].mxu1 }
 0x2ca   : > { %v1781_v19 = vpop.f32.mrb[63].mxu1 }
 0x2cb   : > { %v1782_v24 = vadd.f32 %v1781_v19, %v1669_v7 }
 0x2df   : > { %v2580_v21 = vpop.f32.mrb[52].mxu1 }
 0x2e0   : > { %v1952_v46 = vadd.f32 %v2580_v21, %v2206_v20  ;;  %v1909_v15 = vpop.f32.mrb[53].mxu1 }
 0x2e1   : > { %v1950_v23 = vadd.f32 %v2206_v20, %v1909_v15  ;;  %v2581_v22 = vpop.f32.mrb[54].mxu1 }
 0x2e2   : > { %v1959_v28 = vmax.f32 %v1952_v46, 0.0  ;;  %v1953_v13 = vadd.f32 %v2581_v22, %v2206_v20  ;;  %v1912_v27 = vpop.f32.mrb[55].mxu1  ;;  %v2027_v46 = vld [vmem:[#allocation6] sm:$0x1] }
 0x2e3   : > { %v1957_v14 = vmax.f32 %v1950_v23, 0.0  ;;  %v1951_v25 = vadd.f32 %v2206_v20, %v1912_v27 }
 0x2e4   : > { %1966 = vst [vmem:[#allocation5 + $0x10] sm:$0xff] %v1959_v28  ;;  %v1960_v51 = vmax.f32 %v1953_v13, 0.0 }
 0x2e5   : > { %1964 = vst [vmem:[#allocation5] sm:$0xff] %v1957_v14  ;;  %v1958_v2 = vmax.f32 %v1951_v25, 0.0 }
 0x2e6   : > { %1967 = vst [vmem:[#allocation5 + $0x18] sm:$0xff] %v1960_v51 }
 0x2e7   : > { %1965 = vst [vmem:[#allocation5 + $0x8] sm:$0xff] %v1958_v2  ;;  %v2584_v29 = vpop.f32.mrb[64].mxu1 }
 0x2e8   : > { %v1945_v31 = vadd.f32 %v2584_v29, %v1787_v11  ;;  %v1925_v32 = vpop.f32.mrb[65].mxu1 }
 0x2e9   : > { %v1943_v33 = vadd.f32 %v1925_v32, %v1779_v16  ;;  %v2585_v34 = vpop.f32.mrb[66].mxu1 }
 0x2ea   : > { %v1956_v35 = vadd.f32 %v2206_v20, %v1945_v31  ;;  %v1928_v37 = vpop.f32.mrb[67].mxu1 }
 0x2eb   : > { %v1954_v38 = vadd.f32 %v2206_v20, %v1943_v33  ;;  %v1944_v39 = vadd.f32 %v1928_v37, %v1782_v24 }
 0x2ec   : > { %v1963_v40 = vmax.f32 %v1956_v35, 0.0 }
 0x2ed   : > { %v1961_v58 = vmax.f32 %v1954_v38, 0.0  ;;  %v1955_v42 = vadd.f32 %v2206_v20, %v1944_v39  ;;  %v1973_v26 = vld [vmem:[#allocation5 + $0x10] ss:$2 sm:$0xff]  ;;  %v1981_v44 = vld [vmem:[#allocation5 + $0x11] ss:$2 sm:$0xff] }
 0x2ee   : > { %1970 = vst [vmem:[#allocation5 + $0x30] sm:$0xff] %v1963_v40  ;;  %v1971_v52 = vld [vmem:[#allocation5] ss:$2 sm:$0xff]  ;;  %v1979_v45 = vld [vmem:[#allocation5 + $0x1] ss:$2 sm:$0xff]  ;;  %v1987_v47 = vmax.f32 %v1973_v26, %v1981_v44 }
 0x2ef   : > { %1968 = vst [vmem:[#allocation5 + $0x20] sm:$0xff] %v1961_v58  ;;  %v1962_v57 = vmax.f32 %v1955_v42, 0.0  ;;  %v1986_v0 = vmax.f32 %v1971_v52, %v1979_v45 }
 0x2f0   : > { %v1995_v49 = vmul.f32 %v2207_v1, %v1987_v47 }
 0x2f1   : > { %1969 = vst [vmem:[#allocation5 + $0x28] sm:$0xff] %v1962_v57  ;;  %v1994_v30 = vmul.f32 %v2207_v1, %v1986_v0 }
 0x2f2   : > { %v2003_v55 = vadd.f32 %v2208_v48, %v1995_v49 }
 0x2f3   : > { %v2002_v54 = vadd.f32 %v2208_v48, %v1994_v30 }
 0x2f4   : > { %v2011_v43 = vmul.f32 %v2007_v56, %v2003_v55 }
 0x2f5   : > { %v1977_v50 = vld [vmem:[#allocation5 + $0x30] ss:$2 sm:$0x3]  ;;  %v1985_v63 = vld [vmem:[#allocation5 + $0x31] ss:$2 sm:$0x3]  ;;  %v2010_v3 = vmul.f32 %v2006_v60, %v2002_v54 }
 0x2f6   : > { %v1989_v53 = vmax.f32 %v1977_v50, %v1985_v63 }
 0x2f7   : > { %v2014_v7 = vadd.f32 %v2011_v43, %v2010_v3 }
 0x2f8   : > { %v1975_v5 = vld [vmem:[#allocation5 + $0x20] ss:$2 sm:$0xff]  ;;  %v1983_v59 = vld [vmem:[#allocation5 + $0x21] ss:$2 sm:$0xff]  ;;  %v1997_v9 = vmul.f32 %v2207_v1, %v1989_v53 }
 0x2f9   : > { %v1988_v36 = vmax.f32 %v1975_v5, %v1983_v59 }
 0x2fa   : > { %v2005_v62 = vadd.f32 %v2208_v48, %v1997_v9 }
 0x2fb   : > { %v1996_v10 = vmul.f32 %v2207_v1, %v1988_v36 }
 0x2fc   : > { %v2013_v4 = vmul.f32 %v2009_v61, %v2005_v62 }
 0x2fd   : > { %v2004_v6 = vadd.f32 %v2208_v48, %v1996_v10 }
 0x2fe   : > { %v2017_v11 = vsel %vm2016_vm1, %v2013_v4, 0.0 }
 0x2ff   : > { %v2012_v41 = vmul.f32 %v2008_v18, %v2004_v6 }
 0x301   : > { %v2015_v8 = vadd.f32 %v2014_v7, %v2012_v41 }
 0x303   : > { %v2018_v12 = vadd.f32 %v2017_v11, %v2015_v8 }
 0x305   : > { %v2019_v16 = vrot.slane %v2018_v12, 4 }
 0x307   : > { %v2020_v17 = vadd.f32 %v2019_v16, %v2018_v12 }
 0x309   : > { %v2021_v19 = vrot.slane %v2020_v17, 2 }
 0x30b   : > { %v2022_v24 = vadd.f32 %v2021_v19, %v2020_v17 }
 0x30d   : > { %v2023_v20 = vrot.slane %v2022_v24, 1 }
 0x30f   : > { %v2024_v21 = vadd.f32 %v2023_v20, %v2022_v24 }
 0x311   : > { %2025 = vadd.xlane.f32.xlu0 %v2024_v21 }
 0x39e   : > { %v2026_v15 = vpop.xlane.xlu0 %2025 }
 0x39f   : > { %v2028_v23 = vadd.f32 %v2027_v46, %v2026_v15 }
 0x3a1   : > { %v2029_v22 = vsub.f32 0.0, %v2028_v23 }
 0x3a3   : > { %v2030_v28 = vmul.f32 1.442695, %v2029_v22 }
 0x3a5   : > { %2653 = vpow2.f32 %v2030_v28 }
 0x3af   : > { %v2654_v13 = vpop.eup %2653 }
 0x3b0   : > { %v2032_v27 = vadd.f32 1.0, %v2654_v13 }
 0x3b2   : > { %2655 = vrcp.f32 %v2032_v27 }
 0x3bc   : > { %v2656_v14 = vpop.eup %2655 }
 0x3bd   : > { %2035 = vst.msk [vmem:[%s249_s11] sm:$0x1] %vm2034_vm2, %v2656_v14 }
 0x3be PF: > { %s18_s23 = sadd.s32 1, %s2664_s23  }
 0x3bf   : > { %p15_p4 = scmp.ge.s32.totalorder %s18_s23, 4  }
 0x3c1   :  { %17 = sbr.rel (!%p15_p4) target bundleno = 3 (0x3), region = 207 }

</bundles_post_ra>
